<compile_context>
chip_gen: v7x
topology: tpu7x:2x2x1
jax: 0.10.0
libtpu: 0.0.40
codegen_flags: <defaults>
</compile_context>

<pallas_src>
import functools

import jax
import jax.numpy as jnp
from jax import lax
from jax.experimental import pallas as pl
from jax.experimental.pallas import tpu as pltpu


# ------------------------------ fused kernel --------------------------------


def _fused_gnn_kernel(
    src_ref, dst_ref, psrc_ref, pdst_ref,          # int32 index tensors
    nfeat_ref, efeat_ref,                          # node / edge features
    npw_ref, npb_ref,                              # node_proj
    enw_ref, enb_ref,                              # shared edge_nn
    c1b_ref, c2b_ref,                              # NNConv biases
    pw1_ref, pb1_ref, pw2_ref, pb2_ref,            # edge predictor MLP
    out_ref,
    *, n_nodes, n_edges, n_pred, hidden,
):
    f32 = jnp.float32

    # ---- node projection: h = node_feat @ Wp + bp  -> (N, H) ---------------
    h = jnp.dot(nfeat_ref[...], npw_ref[...], preferred_element_type=f32)
    h = h + npb_ref[...]

    # ---- shared edge_nn: per-edge weights, kept flat (E, H*H) in VMEM ------
    we = jnp.dot(efeat_ref[...], enw_ref[...], preferred_element_type=f32)
    we = jnp.maximum(we + enb_ref[...], 0.0)

    # ---- gather / mean-aggregation matrices built in-kernel from indices ---
    # gsrc[e, v] = 1 if src[e] == v            (E, N): h_src = gsrc @ h (MXU)
    gsrc = jnp.where(
        lax.broadcasted_iota(jnp.int32, (n_edges, n_nodes), 1) == src_ref[...],
        1.0, 0.0)
    # agg[v, e] = 1/in_deg(v) if dst[e] == v   (N, E): mean reducer as matmul
    hit = jnp.where(
        lax.broadcasted_iota(jnp.int32, (n_nodes, n_edges), 0) == dst_ref[...],
        1.0, 0.0)
    deg = jnp.sum(hit, axis=1, keepdims=True)
    agg = hit / jnp.maximum(deg, 1.0)

    def nnconv_relu(hn, bias_row):
        # gather source-node features with an MXU matmul (no HBM roundtrip)
        h_src = jnp.dot(gsrc, hn, preferred_element_type=f32)          # (E, H)
        # per-edge message m_e = h_src[e] @ W_e with W_e = we[e].reshape(H, H).
        # Reduce over H_in as an unrolled chain of VPU FMAs on (E, H) slabs:
        # no (E, H, H) broadcast intermediate, no cross-sublane XLU reduce.
        msgs = jnp.zeros((n_edges, hidden), f32)
        for i in range(hidden):
            msgs = msgs + h_src[:, i:i + 1] * we[:, i * hidden:(i + 1) * hidden]
        # mean over destination nodes on the MXU, then NNConv bias + ReLU
        out = jnp.dot(agg, msgs, preferred_element_type=f32) + bias_row
        return jnp.maximum(out, 0.0)

    h = nnconv_relu(h, c1b_ref[...])
    h = nnconv_relu(h, c2b_ref[...])

    # ---- edge predictor on (src, dst) node embeddings ----------------------
    psrc_oh = jnp.where(
        lax.broadcasted_iota(jnp.int32, (n_pred, n_nodes), 1) == psrc_ref[...],
        1.0, 0.0)
    pdst_oh = jnp.where(
        lax.broadcasted_iota(jnp.int32, (n_pred, n_nodes), 1) == pdst_ref[...],
        1.0, 0.0)
    sh = jnp.dot(psrc_oh, h, preferred_element_type=f32)               # (P, H)
    dh = jnp.dot(pdst_oh, h, preferred_element_type=f32)               # (P, H)
    # concat([sh, dh], 1) @ W1 == sh @ W1[:H] + dh @ W1[H:]  (avoids lane concat)
    w1 = pw1_ref[...]
    z = (jnp.dot(sh, w1[:hidden, :], preferred_element_type=f32)
         + jnp.dot(dh, w1[hidden:, :], preferred_element_type=f32)
         + pb1_ref[...])
    z = jnp.maximum(z, 0.0)
    logits = jnp.dot(z, pw2_ref[...], preferred_element_type=f32) + pb2_ref[...]
    out_ref[...] = logits.astype(out_ref.dtype)


def gnn_forward(params, node_feat, edge_feat, src, dst, edge_list):
    n_nodes = node_feat.shape[0]
    n_edges = edge_feat.shape[0]
    n_pred = edge_list.shape[0]
    hidden = params["node_proj_w"].shape[1]
    out_feats = params["pred_w2"].shape[1]

    kernel = functools.partial(
        _fused_gnn_kernel,
        n_nodes=n_nodes, n_edges=n_edges, n_pred=n_pred, hidden=hidden,
    )

    args = (
        src.astype(jnp.int32).reshape(n_edges, 1),
        dst.astype(jnp.int32).reshape(1, n_edges),
        edge_list[:, 0].astype(jnp.int32).reshape(n_pred, 1),
        edge_list[:, 1].astype(jnp.int32).reshape(n_pred, 1),
        node_feat, edge_feat,
        params["node_proj_w"], params["node_proj_b"].reshape(1, hidden),
        params["edge_nn_w"], params["edge_nn_b"].reshape(1, hidden * hidden),
        params["conv1_b"].reshape(1, hidden),
        params["conv2_b"].reshape(1, hidden),
        params["pred_w1"], params["pred_b1"].reshape(1, hidden),
        params["pred_w2"], params["pred_b2"].reshape(1, out_feats),
    )

    vmem_spec = pl.BlockSpec(memory_space=pltpu.MemorySpace.VMEM)
    return pl.pallas_call(
        kernel,
        out_shape=jax.ShapeDtypeStruct((n_pred, out_feats), jnp.float32),
        in_specs=[vmem_spec] * len(args),
        out_specs=vmem_spec,
    )(*args)


# ------------------------------- reference ----------------------------------


def reference_forward(params, node_feat, edge_feat, src, dst, edge_list):
    """Pure-JAX reference of the same semantics (for correctness check)."""
    n_nodes = node_feat.shape[0]
    n_edges = edge_feat.shape[0]
    hidden = params["node_proj_w"].shape[1]
    h = node_feat @ params["node_proj_w"] + params["node_proj_b"]
    we = jax.nn.relu(edge_feat @ params["edge_nn_w"] + params["edge_nn_b"])
    we = we.reshape(n_edges, hidden, hidden)

    def conv(hn, bias):
        msgs = jnp.einsum("eh,eho->eo", hn[src], we)
        summed = jnp.zeros((n_nodes, hidden)).at[dst].add(msgs)
        deg = jnp.zeros((n_nodes,)).at[dst].add(1.0)
        return summed / jnp.maximum(deg, 1.0)[:, None] + bias

    h = jax.nn.relu(conv(h, params["conv1_b"]))
    h = jax.nn.relu(conv(h, params["conv2_b"]))
    x = jnp.concatenate([h[edge_list[:, 0]], h[edge_list[:, 1]]], axis=1)
    x = jax.nn.relu(x @ params["pred_w1"] + params["pred_b1"])
    return x @ params["pred_w2"] + params["pred_b2"]


def init_linear(key, fan_in, fan_out):
    kw, kb = jax.random.split(key)
    bound = 1.0 / jnp.sqrt(jnp.float32(fan_in))
    w = jax.random.uniform(kw, (fan_in, fan_out), jnp.float32, -bound, bound)
    b = jax.random.uniform(kb, (fan_out,), jnp.float32, -bound, bound)
    return w, b


if __name__ == "__main__":
    IN_FEATS, EDGE_FEATS, HIDDEN, OUT_FEATS = 4, 4, 32, 2
    N_NODES, N_EDGES, N_PRED = 8, 16, 8

    root = jax.random.PRNGKey(0)
    keys = jax.random.split(root, 10)

    # Deterministic parameter init (PyTorch-Linear-style uniform bounds).
    node_proj_w, node_proj_b = init_linear(keys[0], IN_FEATS, HIDDEN)
    edge_nn_w, edge_nn_b = init_linear(keys[1], EDGE_FEATS, HIDDEN * HIDDEN)
    _, conv1_b = init_linear(keys[2], HIDDEN, HIDDEN)     # NNConv bias
    _, conv2_b = init_linear(keys[3], HIDDEN, HIDDEN)     # NNConv bias
    pred_w1, pred_b1 = init_linear(keys[4], 2 * HIDDEN, HIDDEN)
    pred_w2, pred_b2 = init_linear(keys[5], HIDDEN, OUT_FEATS)

    params = dict(
        node_proj_w=node_proj_w, node_proj_b=node_proj_b,
        edge_nn_w=edge_nn_w, edge_nn_b=edge_nn_b,
        conv1_b=conv1_b, conv2_b=conv2_b,
        pred_w1=pred_w1, pred_b1=pred_b1,
        pred_w2=pred_w2, pred_b2=pred_b2,
    )

    # Synthetic graph: g.ndata['feat'], g.edata['feat'], edges (src->dst), edge_list.
    node_feat = jax.random.normal(keys[6], (N_NODES, IN_FEATS), jnp.float32)
    edge_feat = jax.random.normal(keys[7], (N_EDGES, EDGE_FEATS), jnp.float32)
    src = jax.random.randint(keys[8], (N_EDGES,), 0, N_NODES)
    dst = jax.random.randint(keys[9], (N_EDGES,), 0, N_NODES)
    edge_list = jnp.stack([src[:N_PRED], dst[:N_PRED]], axis=1)

    logits = gnn_forward(params, node_feat, edge_feat, src, dst, edge_list)
    jax.block_until_ready(logits)

    ref = reference_forward(params, node_feat, edge_feat, src, dst, edge_list)
    assert logits.shape == (N_PRED, OUT_FEATS)
    assert jnp.allclose(logits, ref, atol=1e-3, rtol=1e-3)

    print("KERNEL_OK")
</pallas_src>

<mosaic_0001>
module attributes {stable_mosaic.version = 11 : i64} {
  func.func @_fused_gnn_kernel(%arg0: memref<16x1xi32, #tpu.memory_space<vmem>>, %arg1: memref<1x16xi32, #tpu.memory_space<vmem>>, %arg2: memref<8x1xi32, #tpu.memory_space<vmem>>, %arg3: memref<8x1xi32, #tpu.memory_space<vmem>>, %arg4: memref<8x4xf32, #tpu.memory_space<vmem>>, %arg5: memref<16x4xf32, #tpu.memory_space<vmem>>, %arg6: memref<4x32xf32, #tpu.memory_space<vmem>>, %arg7: memref<1x32xf32, #tpu.memory_space<vmem>>, %arg8: memref<4x1024xf32, #tpu.memory_space<vmem>>, %arg9: memref<1x1024xf32, #tpu.memory_space<vmem>>, %arg10: memref<1x32xf32, #tpu.memory_space<vmem>>, %arg11: memref<1x32xf32, #tpu.memory_space<vmem>>, %arg12: memref<64x32xf32, #tpu.memory_space<vmem>>, %arg13: memref<1x32xf32, #tpu.memory_space<vmem>>, %arg14: memref<32x2xf32, #tpu.memory_space<vmem>>, %arg15: memref<1x2xf32, #tpu.memory_space<vmem>>, %arg16: memref<8x2xf32, #tpu.memory_space<vmem>>) attributes {dimension_semantics = [], scalar_prefetch = 0 : i64, scratch_operands = 0 : i64, tpu.core_type = #tpu.core_type<tc>} {
    %c0 = arith.constant 0 : index
    %c0_0 = arith.constant 0 : index
    %0 = vector.load %arg4[%c0, %c0_0] : memref<8x4xf32, #tpu.memory_space<vmem>>, vector<8x4xf32>
    %c0_1 = arith.constant 0 : index
    %c0_2 = arith.constant 0 : index
    %1 = vector.load %arg6[%c0_1, %c0_2] : memref<4x32xf32, #tpu.memory_space<vmem>>, vector<4x32xf32>
    %cst = arith.constant dense<0.000000e+00> : vector<8x32xf32>
    %2 = tpu.matmul %0, %1, %cst {dimension_numbers = #tpu.dot_dimension_numbers<[1], [0], [0], [1], [0, 0, 1, 1], [], []>} : vector<8x4xf32>, vector<4x32xf32>, vector<8x32xf32> -> vector<8x32xf32>
    %c0_3 = arith.constant 0 : index
    %c0_4 = arith.constant 0 : index
    %3 = vector.load %arg7[%c0_3, %c0_4] : memref<1x32xf32, #tpu.memory_space<vmem>>, vector<1x32xf32>
    %4 = vector.broadcast %3 : vector<1x32xf32> to vector<8x32xf32>
    %5 = arith.addf %2, %4 : vector<8x32xf32>
    %c0_5 = arith.constant 0 : index
    %c0_6 = arith.constant 0 : index
    %6 = vector.load %arg5[%c0_5, %c0_6] : memref<16x4xf32, #tpu.memory_space<vmem>>, vector<16x4xf32>
    %c0_7 = arith.constant 0 : index
    %c0_8 = arith.constant 0 : index
    %7 = vector.load %arg8[%c0_7, %c0_8] : memref<4x1024xf32, #tpu.memory_space<vmem>>, vector<4x1024xf32>
    %cst_9 = arith.constant dense<0.000000e+00> : vector<16x1024xf32>
    %8 = tpu.matmul %6, %7, %cst_9 {dimension_numbers = #tpu.dot_dimension_numbers<[1], [0], [0], [1], [0, 0, 1, 1], [], []>} : vector<16x4xf32>, vector<4x1024xf32>, vector<16x1024xf32> -> vector<16x1024xf32>
    %c0_10 = arith.constant 0 : index
    %c0_11 = arith.constant 0 : index
    %9 = vector.load %arg9[%c0_10, %c0_11] : memref<1x1024xf32, #tpu.memory_space<vmem>>, vector<1x1024xf32>
    %10 = vector.broadcast %9 : vector<1x1024xf32> to vector<16x1024xf32>
    %11 = arith.addf %8, %10 : vector<16x1024xf32>
    %cst_12 = arith.constant 0.000000e+00 : f32
    %12 = vector.broadcast %cst_12 : f32 to vector<16x1024xf32>
    %13 = arith.maximumf %11, %12 : vector<16x1024xf32>
    %14 = tpu.iota {dimensions = array<i32: 1>} : vector<16x8xi32>
    %c0_13 = arith.constant 0 : index
    %c0_14 = arith.constant 0 : index
    %15 = vector.load %arg0[%c0_13, %c0_14] : memref<16x1xi32, #tpu.memory_space<vmem>>, vector<16x1xi32>
    %16 = vector.broadcast %15 : vector<16x1xi32> to vector<16x8xi32>
    %17 = arith.cmpi eq, %14, %16 : vector<16x8xi32>
    %cst_15 = arith.constant 1.000000e+00 : f32
    %cst_16 = arith.constant 0.000000e+00 : f32
    %18 = vector.broadcast %cst_15 : f32 to vector<16x8xf32>
    %19 = vector.broadcast %cst_16 : f32 to vector<16x8xf32>
    %20 = arith.select %17, %18, %19 : vector<16x8xi1>, vector<16x8xf32>
    %21 = tpu.iota {dimensions = array<i32: 0>} : vector<8x16xi32>
    %c0_17 = arith.constant 0 : index
    %c0_18 = arith.constant 0 : index
    %22 = vector.load %arg1[%c0_17, %c0_18] : memref<1x16xi32, #tpu.memory_space<vmem>>, vector<1x16xi32>
    %23 = vector.broadcast %22 : vector<1x16xi32> to vector<8x16xi32>
    %24 = arith.cmpi eq, %21, %23 : vector<8x16xi32>
    %cst_19 = arith.constant 1.000000e+00 : f32
    %cst_20 = arith.constant 0.000000e+00 : f32
    %25 = vector.broadcast %cst_19 : f32 to vector<8x16xf32>
    %26 = vector.broadcast %cst_20 : f32 to vector<8x16xf32>
    %27 = arith.select %24, %25, %26 : vector<8x16xi1>, vector<8x16xf32>
    %cst_21 = arith.constant dense<0.000000e+00> : vector<8xf32>
    %28 = vector.multi_reduction <add>, %27, %cst_21 [1] : vector<8x16xf32> to vector<8xf32>
    %29 = vector.shape_cast %28 : vector<8xf32> to vector<8x1xf32>
    %cst_22 = arith.constant 1.000000e+00 : f32
    %30 = vector.broadcast %cst_22 : f32 to vector<8x1xf32>
    %31 = arith.maximumf %29, %30 : vector<8x1xf32>
    %32 = vector.broadcast %31 : vector<8x1xf32> to vector<8x16xf32>
    %33 = arith.divf %27, %32 : vector<8x16xf32>
    %c0_23 = arith.constant 0 : index
    %c0_24 = arith.constant 0 : index
    %34 = vector.load %arg10[%c0_23, %c0_24] : memref<1x32xf32, #tpu.memory_space<vmem>>, vector<1x32xf32>
    %cst_25 = arith.constant dense<0.000000e+00> : vector<16x32xf32>
    %35 = tpu.matmul %20, %5, %cst_25 {dimension_numbers = #tpu.dot_dimension_numbers<[1], [0], [0], [1], [0, 0, 1, 1], [], []>} : vector<16x8xf32>, vector<8x32xf32>, vector<16x32xf32> -> vector<16x32xf32>
    %cst_26 = arith.constant 0.000000e+00 : f32
    %36 = vector.broadcast %cst_26 : f32 to vector<16x32xf32>
    %37 = vector.extract_strided_slice %35 {offsets = [0, 0], sizes = [16, 1], strides = [1, 1]} : vector<16x32xf32> to vector<16x1xf32>
    %38 = vector.extract_strided_slice %13 {offsets = [0, 0], sizes = [16, 32], strides = [1, 1]} : vector<16x1024xf32> to vector<16x32xf32>
    %39 = vector.broadcast %37 : vector<16x1xf32> to vector<16x32xf32>
    %40 = arith.mulf %39, %38 : vector<16x32xf32>
    %41 = arith.addf %36, %40 : vector<16x32xf32>
    %42 = vector.extract_strided_slice %35 {offsets = [0, 1], sizes = [16, 1], strides = [1, 1]} : vector<16x32xf32> to vector<16x1xf32>
    %43 = vector.extract_strided_slice %13 {offsets = [0, 32], sizes = [16, 32], strides = [1, 1]} : vector<16x1024xf32> to vector<16x32xf32>
    %44 = vector.broadcast %42 : vector<16x1xf32> to vector<16x32xf32>
    %45 = arith.mulf %44, %43 : vector<16x32xf32>
    %46 = arith.addf %41, %45 : vector<16x32xf32>
    %47 = vector.extract_strided_slice %35 {offsets = [0, 2], sizes = [16, 1], strides = [1, 1]} : vector<16x32xf32> to vector<16x1xf32>
    %48 = vector.extract_strided_slice %13 {offsets = [0, 64], sizes = [16, 32], strides = [1, 1]} : vector<16x1024xf32> to vector<16x32xf32>
    %49 = vector.broadcast %47 : vector<16x1xf32> to vector<16x32xf32>
    %50 = arith.mulf %49, %48 : vector<16x32xf32>
    %51 = arith.addf %46, %50 : vector<16x32xf32>
    %52 = vector.extract_strided_slice %35 {offsets = [0, 3], sizes = [16, 1], strides = [1, 1]} : vector<16x32xf32> to vector<16x1xf32>
    %53 = vector.extract_strided_slice %13 {offsets = [0, 96], sizes = [16, 32], strides = [1, 1]} : vector<16x1024xf32> to vector<16x32xf32>
    %54 = vector.broadcast %52 : vector<16x1xf32> to vector<16x32xf32>
    %55 = arith.mulf %54, %53 : vector<16x32xf32>
    %56 = arith.addf %51, %55 : vector<16x32xf32>
    %57 = vector.extract_strided_slice %35 {offsets = [0, 4], sizes = [16, 1], strides = [1, 1]} : vector<16x32xf32> to vector<16x1xf32>
    %58 = vector.extract_strided_slice %13 {offsets = [0, 128], sizes = [16, 32], strides = [1, 1]} : vector<16x1024xf32> to vector<16x32xf32>
    %59 = vector.broadcast %57 : vector<16x1xf32> to vector<16x32xf32>
    %60 = arith.mulf %59, %58 : vector<16x32xf32>
    %61 = arith.addf %56, %60 : vector<16x32xf32>
    %62 = vector.extract_strided_slice %35 {offsets = [0, 5], sizes = [16, 1], strides = [1, 1]} : vector<16x32xf32> to vector<16x1xf32>
    %63 = vector.extract_strided_slice %13 {offsets = [0, 160], sizes = [16, 32], strides = [1, 1]} : vector<16x1024xf32> to vector<16x32xf32>
    %64 = vector.broadcast %62 : vector<16x1xf32> to vector<16x32xf32>
    %65 = arith.mulf %64, %63 : vector<16x32xf32>
    %66 = arith.addf %61, %65 : vector<16x32xf32>
    %67 = vector.extract_strided_slice %35 {offsets = [0, 6], sizes = [16, 1], strides = [1, 1]} : vector<16x32xf32> to vector<16x1xf32>
    %68 = vector.extract_strided_slice %13 {offsets = [0, 192], sizes = [16, 32], strides = [1, 1]} : vector<16x1024xf32> to vector<16x32xf32>
    %69 = vector.broadcast %67 : vector<16x1xf32> to vector<16x32xf32>
    %70 = arith.mulf %69, %68 : vector<16x32xf32>
    %71 = arith.addf %66, %70 : vector<16x32xf32>
    %72 = vector.extract_strided_slice %35 {offsets = [0, 7], sizes = [16, 1], strides = [1, 1]} : vector<16x32xf32> to vector<16x1xf32>
    %73 = vector.extract_strided_slice %13 {offsets = [0, 224], sizes = [16, 32], strides = [1, 1]} : vector<16x1024xf32> to vector<16x32xf32>
    %74 = vector.broadcast %72 : vector<16x1xf32> to vector<16x32xf32>
    %75 = arith.mulf %74, %73 : vector<16x32xf32>
    %76 = arith.addf %71, %75 : vector<16x32xf32>
    %77 = vector.extract_strided_slice %35 {offsets = [0, 8], sizes = [16, 1], strides = [1, 1]} : vector<16x32xf32> to vector<16x1xf32>
    %78 = vector.extract_strided_slice %13 {offsets = [0, 256], sizes = [16, 32], strides = [1, 1]} : vector<16x1024xf32> to vector<16x32xf32>
    %79 = vector.broadcast %77 : vector<16x1xf32> to vector<16x32xf32>
    %80 = arith.mulf %79, %78 : vector<16x32xf32>
    %81 = arith.addf %76, %80 : vector<16x32xf32>
    %82 = vector.extract_strided_slice %35 {offsets = [0, 9], sizes = [16, 1], strides = [1, 1]} : vector<16x32xf32> to vector<16x1xf32>
    %83 = vector.extract_strided_slice %13 {offsets = [0, 288], sizes = [16, 32], strides = [1, 1]} : vector<16x1024xf32> to vector<16x32xf32>
    %84 = vector.broadcast %82 : vector<16x1xf32> to vector<16x32xf32>
    %85 = arith.mulf %84, %83 : vector<16x32xf32>
    %86 = arith.addf %81, %85 : vector<16x32xf32>
    %87 = vector.extract_strided_slice %35 {offsets = [0, 10], sizes = [16, 1], strides = [1, 1]} : vector<16x32xf32> to vector<16x1xf32>
    %88 = vector.extract_strided_slice %13 {offsets = [0, 320], sizes = [16, 32], strides = [1, 1]} : vector<16x1024xf32> to vector<16x32xf32>
    %89 = vector.broadcast %87 : vector<16x1xf32> to vector<16x32xf32>
    %90 = arith.mulf %89, %88 : vector<16x32xf32>
    %91 = arith.addf %86, %90 : vector<16x32xf32>
    %92 = vector.extract_strided_slice %35 {offsets = [0, 11], sizes = [16, 1], strides = [1, 1]} : vector<16x32xf32> to vector<16x1xf32>
    %93 = vector.extract_strided_slice %13 {offsets = [0, 352], sizes = [16, 32], strides = [1, 1]} : vector<16x1024xf32> to vector<16x32xf32>
    %94 = vector.broadcast %92 : vector<16x1xf32> to vector<16x32xf32>
    %95 = arith.mulf %94, %93 : vector<16x32xf32>
    %96 = arith.addf %91, %95 : vector<16x32xf32>
    %97 = vector.extract_strided_slice %35 {offsets = [0, 12], sizes = [16, 1], strides = [1, 1]} : vector<16x32xf32> to vector<16x1xf32>
    %98 = vector.extract_strided_slice %13 {offsets = [0, 384], sizes = [16, 32], strides = [1, 1]} : vector<16x1024xf32> to vector<16x32xf32>
    %99 = vector.broadcast %97 : vector<16x1xf32> to vector<16x32xf32>
    %100 = arith.mulf %99, %98 : vector<16x32xf32>
    %101 = arith.addf %96, %100 : vector<16x32xf32>
    %102 = vector.extract_strided_slice %35 {offsets = [0, 13], sizes = [16, 1], strides = [1, 1]} : vector<16x32xf32> to vector<16x1xf32>
    %103 = vector.extract_strided_slice %13 {offsets = [0, 416], sizes = [16, 32], strides = [1, 1]} : vector<16x1024xf32> to vector<16x32xf32>
    %104 = vector.broadcast %102 : vector<16x1xf32> to vector<16x32xf32>
    %105 = arith.mulf %104, %103 : vector<16x32xf32>
    %106 = arith.addf %101, %105 : vector<16x32xf32>
    %107 = vector.extract_strided_slice %35 {offsets = [0, 14], sizes = [16, 1], strides = [1, 1]} : vector<16x32xf32> to vector<16x1xf32>
    %108 = vector.extract_strided_slice %13 {offsets = [0, 448], sizes = [16, 32], strides = [1, 1]} : vector<16x1024xf32> to vector<16x32xf32>
    %109 = vector.broadcast %107 : vector<16x1xf32> to vector<16x32xf32>
    %110 = arith.mulf %109, %108 : vector<16x32xf32>
    %111 = arith.addf %106, %110 : vector<16x32xf32>
    %112 = vector.extract_strided_slice %35 {offsets = [0, 15], sizes = [16, 1], strides = [1, 1]} : vector<16x32xf32> to vector<16x1xf32>
    %113 = vector.extract_strided_slice %13 {offsets = [0, 480], sizes = [16, 32], strides = [1, 1]} : vector<16x1024xf32> to vector<16x32xf32>
    %114 = vector.broadcast %112 : vector<16x1xf32> to vector<16x32xf32>
    %115 = arith.mulf %114, %113 : vector<16x32xf32>
    %116 = arith.addf %111, %115 : vector<16x32xf32>
    %117 = vector.extract_strided_slice %35 {offsets = [0, 16], sizes = [16, 1], strides = [1, 1]} : vector<16x32xf32> to vector<16x1xf32>
    %118 = vector.extract_strided_slice %13 {offsets = [0, 512], sizes = [16, 32], strides = [1, 1]} : vector<16x1024xf32> to vector<16x32xf32>
    %119 = vector.broadcast %117 : vector<16x1xf32> to vector<16x32xf32>
    %120 = arith.mulf %119, %118 : vector<16x32xf32>
    %121 = arith.addf %116, %120 : vector<16x32xf32>
    %122 = vector.extract_strided_slice %35 {offsets = [0, 17], sizes = [16, 1], strides = [1, 1]} : vector<16x32xf32> to vector<16x1xf32>
    %123 = vector.extract_strided_slice %13 {offsets = [0, 544], sizes = [16, 32], strides = [1, 1]} : vector<16x1024xf32> to vector<16x32xf32>
    %124 = vector.broadcast %122 : vector<16x1xf32> to vector<16x32xf32>
    %125 = arith.mulf %124, %123 : vector<16x32xf32>
    %126 = arith.addf %121, %125 : vector<16x32xf32>
    %127 = vector.extract_strided_slice %35 {offsets = [0, 18], sizes = [16, 1], strides = [1, 1]} : vector<16x32xf32> to vector<16x1xf32>
    %128 = vector.extract_strided_slice %13 {offsets = [0, 576], sizes = [16, 32], strides = [1, 1]} : vector<16x1024xf32> to vector<16x32xf32>
    %129 = vector.broadcast %127 : vector<16x1xf32> to vector<16x32xf32>
    %130 = arith.mulf %129, %128 : vector<16x32xf32>
    %131 = arith.addf %126, %130 : vector<16x32xf32>
    %132 = vector.extract_strided_slice %35 {offsets = [0, 19], sizes = [16, 1], strides = [1, 1]} : vector<16x32xf32> to vector<16x1xf32>
    %133 = vector.extract_strided_slice %13 {offsets = [0, 608], sizes = [16, 32], strides = [1, 1]} : vector<16x1024xf32> to vector<16x32xf32>
    %134 = vector.broadcast %132 : vector<16x1xf32> to vector<16x32xf32>
    %135 = arith.mulf %134, %133 : vector<16x32xf32>
    %136 = arith.addf %131, %135 : vector<16x32xf32>
    %137 = vector.extract_strided_slice %35 {offsets = [0, 20], sizes = [16, 1], strides = [1, 1]} : vector<16x32xf32> to vector<16x1xf32>
    %138 = vector.extract_strided_slice %13 {offsets = [0, 640], sizes = [16, 32], strides = [1, 1]} : vector<16x1024xf32> to vector<16x32xf32>
    %139 = vector.broadcast %137 : vector<16x1xf32> to vector<16x32xf32>
    %140 = arith.mulf %139, %138 : vector<16x32xf32>
    %141 = arith.addf %136, %140 : vector<16x32xf32>
    %142 = vector.extract_strided_slice %35 {offsets = [0, 21], sizes = [16, 1], strides = [1, 1]} : vector<16x32xf32> to vector<16x1xf32>
    %143 = vector.extract_strided_slice %13 {offsets = [0, 672], sizes = [16, 32], strides = [1, 1]} : vector<16x1024xf32> to vector<16x32xf32>
    %144 = vector.broadcast %142 : vector<16x1xf32> to vector<16x32xf32>
    %145 = arith.mulf %144, %143 : vector<16x32xf32>
    %146 = arith.addf %141, %145 : vector<16x32xf32>
    %147 = vector.extract_strided_slice %35 {offsets = [0, 22], sizes = [16, 1], strides = [1, 1]} : vector<16x32xf32> to vector<16x1xf32>
    %148 = vector.extract_strided_slice %13 {offsets = [0, 704], sizes = [16, 32], strides = [1, 1]} : vector<16x1024xf32> to vector<16x32xf32>
    %149 = vector.broadcast %147 : vector<16x1xf32> to vector<16x32xf32>
    %150 = arith.mulf %149, %148 : vector<16x32xf32>
    %151 = arith.addf %146, %150 : vector<16x32xf32>
    %152 = vector.extract_strided_slice %35 {offsets = [0, 23], sizes = [16, 1], strides = [1, 1]} : vector<16x32xf32> to vector<16x1xf32>
    %153 = vector.extract_strided_slice %13 {offsets = [0, 736], sizes = [16, 32], strides = [1, 1]} : vector<16x1024xf32> to vector<16x32xf32>
    %154 = vector.broadcast %152 : vector<16x1xf32> to vector<16x32xf32>
    %155 = arith.mulf %154, %153 : vector<16x32xf32>
    %156 = arith.addf %151, %155 : vector<16x32xf32>
    %157 = vector.extract_strided_slice %35 {offsets = [0, 24], sizes = [16, 1], strides = [1, 1]} : vector<16x32xf32> to vector<16x1xf32>
    %158 = vector.extract_strided_slice %13 {offsets = [0, 768], sizes = [16, 32], strides = [1, 1]} : vector<16x1024xf32> to vector<16x32xf32>
    %159 = vector.broadcast %157 : vector<16x1xf32> to vector<16x32xf32>
    %160 = arith.mulf %159, %158 : vector<16x32xf32>
    %161 = arith.addf %156, %160 : vector<16x32xf32>
    %162 = vector.extract_strided_slice %35 {offsets = [0, 25], sizes = [16, 1], strides = [1, 1]} : vector<16x32xf32> to vector<16x1xf32>
    %163 = vector.extract_strided_slice %13 {offsets = [0, 800], sizes = [16, 32], strides = [1, 1]} : vector<16x1024xf32> to vector<16x32xf32>
    %164 = vector.broadcast %162 : vector<16x1xf32> to vector<16x32xf32>
    %165 = arith.mulf %164, %163 : vector<16x32xf32>
    %166 = arith.addf %161, %165 : vector<16x32xf32>
    %167 = vector.extract_strided_slice %35 {offsets = [0, 26], sizes = [16, 1], strides = [1, 1]} : vector<16x32xf32> to vector<16x1xf32>
    %168 = vector.extract_strided_slice %13 {offsets = [0, 832], sizes = [16, 32], strides = [1, 1]} : vector<16x1024xf32> to vector<16x32xf32>
    %169 = vector.broadcast %167 : vector<16x1xf32> to vector<16x32xf32>
    %170 = arith.mulf %169, %168 : vector<16x32xf32>
    %171 = arith.addf %166, %170 : vector<16x32xf32>
    %172 = vector.extract_strided_slice %35 {offsets = [0, 27], sizes = [16, 1], strides = [1, 1]} : vector<16x32xf32> to vector<16x1xf32>
    %173 = vector.extract_strided_slice %13 {offsets = [0, 864], sizes = [16, 32], strides = [1, 1]} : vector<16x1024xf32> to vector<16x32xf32>
    %174 = vector.broadcast %172 : vector<16x1xf32> to vector<16x32xf32>
    %175 = arith.mulf %174, %173 : vector<16x32xf32>
    %176 = arith.addf %171, %175 : vector<16x32xf32>
    %177 = vector.extract_strided_slice %35 {offsets = [0, 28], sizes = [16, 1], strides = [1, 1]} : vector<16x32xf32> to vector<16x1xf32>
    %178 = vector.extract_strided_slice %13 {offsets = [0, 896], sizes = [16, 32], strides = [1, 1]} : vector<16x1024xf32> to vector<16x32xf32>
    %179 = vector.broadcast %177 : vector<16x1xf32> to vector<16x32xf32>
    %180 = arith.mulf %179, %178 : vector<16x32xf32>
    %181 = arith.addf %176, %180 : vector<16x32xf32>
    %182 = vector.extract_strided_slice %35 {offsets = [0, 29], sizes = [16, 1], strides = [1, 1]} : vector<16x32xf32> to vector<16x1xf32>
    %183 = vector.extract_strided_slice %13 {offsets = [0, 928], sizes = [16, 32], strides = [1, 1]} : vector<16x1024xf32> to vector<16x32xf32>
    %184 = vector.broadcast %182 : vector<16x1xf32> to vector<16x32xf32>
    %185 = arith.mulf %184, %183 : vector<16x32xf32>
    %186 = arith.addf %181, %185 : vector<16x32xf32>
    %187 = vector.extract_strided_slice %35 {offsets = [0, 30], sizes = [16, 1], strides = [1, 1]} : vector<16x32xf32> to vector<16x1xf32>
    %188 = vector.extract_strided_slice %13 {offsets = [0, 960], sizes = [16, 32], strides = [1, 1]} : vector<16x1024xf32> to vector<16x32xf32>
    %189 = vector.broadcast %187 : vector<16x1xf32> to vector<16x32xf32>
    %190 = arith.mulf %189, %188 : vector<16x32xf32>
    %191 = arith.addf %186, %190 : vector<16x32xf32>
    %192 = vector.extract_strided_slice %35 {offsets = [0, 31], sizes = [16, 1], strides = [1, 1]} : vector<16x32xf32> to vector<16x1xf32>
    %193 = vector.extract_strided_slice %13 {offsets = [0, 992], sizes = [16, 32], strides = [1, 1]} : vector<16x1024xf32> to vector<16x32xf32>
    %194 = vector.broadcast %192 : vector<16x1xf32> to vector<16x32xf32>
    %195 = arith.mulf %194, %193 : vector<16x32xf32>
    %196 = arith.addf %191, %195 : vector<16x32xf32>
    %cst_27 = arith.constant dense<0.000000e+00> : vector<8x32xf32>
    %197 = tpu.matmul %33, %196, %cst_27 {dimension_numbers = #tpu.dot_dimension_numbers<[1], [0], [0], [1], [0, 0, 1, 1], [], []>} : vector<8x16xf32>, vector<16x32xf32>, vector<8x32xf32> -> vector<8x32xf32>
    %198 = vector.broadcast %34 : vector<1x32xf32> to vector<8x32xf32>
    %199 = arith.addf %197, %198 : vector<8x32xf32>
    %cst_28 = arith.constant 0.000000e+00 : f32
    %200 = vector.broadcast %cst_28 : f32 to vector<8x32xf32>
    %201 = arith.maximumf %199, %200 : vector<8x32xf32>
    %c0_29 = arith.constant 0 : index
    %c0_30 = arith.constant 0 : index
    %202 = vector.load %arg11[%c0_29, %c0_30] : memref<1x32xf32, #tpu.memory_space<vmem>>, vector<1x32xf32>
    %cst_31 = arith.constant dense<0.000000e+00> : vector<16x32xf32>
    %203 = tpu.matmul %20, %201, %cst_31 {dimension_numbers = #tpu.dot_dimension_numbers<[1], [0], [0], [1], [0, 0, 1, 1], [], []>} : vector<16x8xf32>, vector<8x32xf32>, vector<16x32xf32> -> vector<16x32xf32>
    %cst_32 = arith.constant 0.000000e+00 : f32
    %204 = vector.broadcast %cst_32 : f32 to vector<16x32xf32>
    %205 = vector.extract_strided_slice %203 {offsets = [0, 0], sizes = [16, 1], strides = [1, 1]} : vector<16x32xf32> to vector<16x1xf32>
    %206 = vector.extract_strided_slice %13 {offsets = [0, 0], sizes = [16, 32], strides = [1, 1]} : vector<16x1024xf32> to vector<16x32xf32>
    %207 = vector.broadcast %205 : vector<16x1xf32> to vector<16x32xf32>
    %208 = arith.mulf %207, %206 : vector<16x32xf32>
    %209 = arith.addf %204, %208 : vector<16x32xf32>
    %210 = vector.extract_strided_slice %203 {offsets = [0, 1], sizes = [16, 1], strides = [1, 1]} : vector<16x32xf32> to vector<16x1xf32>
    %211 = vector.extract_strided_slice %13 {offsets = [0, 32], sizes = [16, 32], strides = [1, 1]} : vector<16x1024xf32> to vector<16x32xf32>
    %212 = vector.broadcast %210 : vector<16x1xf32> to vector<16x32xf32>
    %213 = arith.mulf %212, %211 : vector<16x32xf32>
    %214 = arith.addf %209, %213 : vector<16x32xf32>
    %215 = vector.extract_strided_slice %203 {offsets = [0, 2], sizes = [16, 1], strides = [1, 1]} : vector<16x32xf32> to vector<16x1xf32>
    %216 = vector.extract_strided_slice %13 {offsets = [0, 64], sizes = [16, 32], strides = [1, 1]} : vector<16x1024xf32> to vector<16x32xf32>
    %217 = vector.broadcast %215 : vector<16x1xf32> to vector<16x32xf32>
    %218 = arith.mulf %217, %216 : vector<16x32xf32>
    %219 = arith.addf %214, %218 : vector<16x32xf32>
    %220 = vector.extract_strided_slice %203 {offsets = [0, 3], sizes = [16, 1], strides = [1, 1]} : vector<16x32xf32> to vector<16x1xf32>
    %221 = vector.extract_strided_slice %13 {offsets = [0, 96], sizes = [16, 32], strides = [1, 1]} : vector<16x1024xf32> to vector<16x32xf32>
    %222 = vector.broadcast %220 : vector<16x1xf32> to vector<16x32xf32>
    %223 = arith.mulf %222, %221 : vector<16x32xf32>
    %224 = arith.addf %219, %223 : vector<16x32xf32>
    %225 = vector.extract_strided_slice %203 {offsets = [0, 4], sizes = [16, 1], strides = [1, 1]} : vector<16x32xf32> to vector<16x1xf32>
    %226 = vector.extract_strided_slice %13 {offsets = [0, 128], sizes = [16, 32], strides = [1, 1]} : vector<16x1024xf32> to vector<16x32xf32>
    %227 = vector.broadcast %225 : vector<16x1xf32> to vector<16x32xf32>
    %228 = arith.mulf %227, %226 : vector<16x32xf32>
    %229 = arith.addf %224, %228 : vector<16x32xf32>
    %230 = vector.extract_strided_slice %203 {offsets = [0, 5], sizes = [16, 1], strides = [1, 1]} : vector<16x32xf32> to vector<16x1xf32>
    %231 = vector.extract_strided_slice %13 {offsets = [0, 160], sizes = [16, 32], strides = [1, 1]} : vector<16x1024xf32> to vector<16x32xf32>
    %232 = vector.broadcast %230 : vector<16x1xf32> to vector<16x32xf32>
    %233 = arith.mulf %232, %231 : vector<16x32xf32>
    %234 = arith.addf %229, %233 : vector<16x32xf32>
    %235 = vector.extract_strided_slice %203 {offsets = [0, 6], sizes = [16, 1], strides = [1, 1]} : vector<16x32xf32> to vector<16x1xf32>
    %236 = vector.extract_strided_slice %13 {offsets = [0, 192], sizes = [16, 32], strides = [1, 1]} : vector<16x1024xf32> to vector<16x32xf32>
    %237 = vector.broadcast %235 : vector<16x1xf32> to vector<16x32xf32>
    %238 = arith.mulf %237, %236 : vector<16x32xf32>
    %239 = arith.addf %234, %238 : vector<16x32xf32>
    %240 = vector.extract_strided_slice %203 {offsets = [0, 7], sizes = [16, 1], strides = [1, 1]} : vector<16x32xf32> to vector<16x1xf32>
    %241 = vector.extract_strided_slice %13 {offsets = [0, 224], sizes = [16, 32], strides = [1, 1]} : vector<16x1024xf32> to vector<16x32xf32>
    %242 = vector.broadcast %240 : vector<16x1xf32> to vector<16x32xf32>
    %243 = arith.mulf %242, %241 : vector<16x32xf32>
    %244 = arith.addf %239, %243 : vector<16x32xf32>
    %245 = vector.extract_strided_slice %203 {offsets = [0, 8], sizes = [16, 1], strides = [1, 1]} : vector<16x32xf32> to vector<16x1xf32>
    %246 = vector.extract_strided_slice %13 {offsets = [0, 256], sizes = [16, 32], strides = [1, 1]} : vector<16x1024xf32> to vector<16x32xf32>
    %247 = vector.broadcast %245 : vector<16x1xf32> to vector<16x32xf32>
    %248 = arith.mulf %247, %246 : vector<16x32xf32>
    %249 = arith.addf %244, %248 : vector<16x32xf32>
    %250 = vector.extract_strided_slice %203 {offsets = [0, 9], sizes = [16, 1], strides = [1, 1]} : vector<16x32xf32> to vector<16x1xf32>
    %251 = vector.extract_strided_slice %13 {offsets = [0, 288], sizes = [16, 32], strides = [1, 1]} : vector<16x1024xf32> to vector<16x32xf32>
    %252 = vector.broadcast %250 : vector<16x1xf32> to vector<16x32xf32>
    %253 = arith.mulf %252, %251 : vector<16x32xf32>
    %254 = arith.addf %249, %253 : vector<16x32xf32>
    %255 = vector.extract_strided_slice %203 {offsets = [0, 10], sizes = [16, 1], strides = [1, 1]} : vector<16x32xf32> to vector<16x1xf32>
    %256 = vector.extract_strided_slice %13 {offsets = [0, 320], sizes = [16, 32], strides = [1, 1]} : vector<16x1024xf32> to vector<16x32xf32>
    %257 = vector.broadcast %255 : vector<16x1xf32> to vector<16x32xf32>
    %258 = arith.mulf %257, %256 : vector<16x32xf32>
    %259 = arith.addf %254, %258 : vector<16x32xf32>
    %260 = vector.extract_strided_slice %203 {offsets = [0, 11], sizes = [16, 1], strides = [1, 1]} : vector<16x32xf32> to vector<16x1xf32>
    %261 = vector.extract_strided_slice %13 {offsets = [0, 352], sizes = [16, 32], strides = [1, 1]} : vector<16x1024xf32> to vector<16x32xf32>
    %262 = vector.broadcast %260 : vector<16x1xf32> to vector<16x32xf32>
    %263 = arith.mulf %262, %261 : vector<16x32xf32>
    %264 = arith.addf %259, %263 : vector<16x32xf32>
    %265 = vector.extract_strided_slice %203 {offsets = [0, 12], sizes = [16, 1], strides = [1, 1]} : vector<16x32xf32> to vector<16x1xf32>
    %266 = vector.extract_strided_slice %13 {offsets = [0, 384], sizes = [16, 32], strides = [1, 1]} : vector<16x1024xf32> to vector<16x32xf32>
    %267 = vector.broadcast %265 : vector<16x1xf32> to vector<16x32xf32>
    %268 = arith.mulf %267, %266 : vector<16x32xf32>
    %269 = arith.addf %264, %268 : vector<16x32xf32>
    %270 = vector.extract_strided_slice %203 {offsets = [0, 13], sizes = [16, 1], strides = [1, 1]} : vector<16x32xf32> to vector<16x1xf32>
    %271 = vector.extract_strided_slice %13 {offsets = [0, 416], sizes = [16, 32], strides = [1, 1]} : vector<16x1024xf32> to vector<16x32xf32>
    %272 = vector.broadcast %270 : vector<16x1xf32> to vector<16x32xf32>
    %273 = arith.mulf %272, %271 : vector<16x32xf32>
    %274 = arith.addf %269, %273 : vector<16x32xf32>
    %275 = vector.extract_strided_slice %203 {offsets = [0, 14], sizes = [16, 1], strides = [1, 1]} : vector<16x32xf32> to vector<16x1xf32>
    %276 = vector.extract_strided_slice %13 {offsets = [0, 448], sizes = [16, 32], strides = [1, 1]} : vector<16x1024xf32> to vector<16x32xf32>
    %277 = vector.broadcast %275 : vector<16x1xf32> to vector<16x32xf32>
    %278 = arith.mulf %277, %276 : vector<16x32xf32>
    %279 = arith.addf %274, %278 : vector<16x32xf32>
    %280 = vector.extract_strided_slice %203 {offsets = [0, 15], sizes = [16, 1], strides = [1, 1]} : vector<16x32xf32> to vector<16x1xf32>
    %281 = vector.extract_strided_slice %13 {offsets = [0, 480], sizes = [16, 32], strides = [1, 1]} : vector<16x1024xf32> to vector<16x32xf32>
    %282 = vector.broadcast %280 : vector<16x1xf32> to vector<16x32xf32>
    %283 = arith.mulf %282, %281 : vector<16x32xf32>
    %284 = arith.addf %279, %283 : vector<16x32xf32>
    %285 = vector.extract_strided_slice %203 {offsets = [0, 16], sizes = [16, 1], strides = [1, 1]} : vector<16x32xf32> to vector<16x1xf32>
    %286 = vector.extract_strided_slice %13 {offsets = [0, 512], sizes = [16, 32], strides = [1, 1]} : vector<16x1024xf32> to vector<16x32xf32>
    %287 = vector.broadcast %285 : vector<16x1xf32> to vector<16x32xf32>
    %288 = arith.mulf %287, %286 : vector<16x32xf32>
    %289 = arith.addf %284, %288 : vector<16x32xf32>
    %290 = vector.extract_strided_slice %203 {offsets = [0, 17], sizes = [16, 1], strides = [1, 1]} : vector<16x32xf32> to vector<16x1xf32>
    %291 = vector.extract_strided_slice %13 {offsets = [0, 544], sizes = [16, 32], strides = [1, 1]} : vector<16x1024xf32> to vector<16x32xf32>
    %292 = vector.broadcast %290 : vector<16x1xf32> to vector<16x32xf32>
    %293 = arith.mulf %292, %291 : vector<16x32xf32>
    %294 = arith.addf %289, %293 : vector<16x32xf32>
    %295 = vector.extract_strided_slice %203 {offsets = [0, 18], sizes = [16, 1], strides = [1, 1]} : vector<16x32xf32> to vector<16x1xf32>
    %296 = vector.extract_strided_slice %13 {offsets = [0, 576], sizes = [16, 32], strides = [1, 1]} : vector<16x1024xf32> to vector<16x32xf32>
    %297 = vector.broadcast %295 : vector<16x1xf32> to vector<16x32xf32>
    %298 = arith.mulf %297, %296 : vector<16x32xf32>
    %299 = arith.addf %294, %298 : vector<16x32xf32>
    %300 = vector.extract_strided_slice %203 {offsets = [0, 19], sizes = [16, 1], strides = [1, 1]} : vector<16x32xf32> to vector<16x1xf32>
    %301 = vector.extract_strided_slice %13 {offsets = [0, 608], sizes = [16, 32], strides = [1, 1]} : vector<16x1024xf32> to vector<16x32xf32>
    %302 = vector.broadcast %300 : vector<16x1xf32> to vector<16x32xf32>
    %303 = arith.mulf %302, %301 : vector<16x32xf32>
    %304 = arith.addf %299, %303 : vector<16x32xf32>
    %305 = vector.extract_strided_slice %203 {offsets = [0, 20], sizes = [16, 1], strides = [1, 1]} : vector<16x32xf32> to vector<16x1xf32>
    %306 = vector.extract_strided_slice %13 {offsets = [0, 640], sizes = [16, 32], strides = [1, 1]} : vector<16x1024xf32> to vector<16x32xf32>
    %307 = vector.broadcast %305 : vector<16x1xf32> to vector<16x32xf32>
    %308 = arith.mulf %307, %306 : vector<16x32xf32>
    %309 = arith.addf %304, %308 : vector<16x32xf32>
    %310 = vector.extract_strided_slice %203 {offsets = [0, 21], sizes = [16, 1], strides = [1, 1]} : vector<16x32xf32> to vector<16x1xf32>
    %311 = vector.extract_strided_slice %13 {offsets = [0, 672], sizes = [16, 32], strides = [1, 1]} : vector<16x1024xf32> to vector<16x32xf32>
    %312 = vector.broadcast %310 : vector<16x1xf32> to vector<16x32xf32>
    %313 = arith.mulf %312, %311 : vector<16x32xf32>
    %314 = arith.addf %309, %313 : vector<16x32xf32>
    %315 = vector.extract_strided_slice %203 {offsets = [0, 22], sizes = [16, 1], strides = [1, 1]} : vector<16x32xf32> to vector<16x1xf32>
    %316 = vector.extract_strided_slice %13 {offsets = [0, 704], sizes = [16, 32], strides = [1, 1]} : vector<16x1024xf32> to vector<16x32xf32>
    %317 = vector.broadcast %315 : vector<16x1xf32> to vector<16x32xf32>
    %318 = arith.mulf %317, %316 : vector<16x32xf32>
    %319 = arith.addf %314, %318 : vector<16x32xf32>
    %320 = vector.extract_strided_slice %203 {offsets = [0, 23], sizes = [16, 1], strides = [1, 1]} : vector<16x32xf32> to vector<16x1xf32>
    %321 = vector.extract_strided_slice %13 {offsets = [0, 736], sizes = [16, 32], strides = [1, 1]} : vector<16x1024xf32> to vector<16x32xf32>
    %322 = vector.broadcast %320 : vector<16x1xf32> to vector<16x32xf32>
    %323 = arith.mulf %322, %321 : vector<16x32xf32>
    %324 = arith.addf %319, %323 : vector<16x32xf32>
    %325 = vector.extract_strided_slice %203 {offsets = [0, 24], sizes = [16, 1], strides = [1, 1]} : vector<16x32xf32> to vector<16x1xf32>
    %326 = vector.extract_strided_slice %13 {offsets = [0, 768], sizes = [16, 32], strides = [1, 1]} : vector<16x1024xf32> to vector<16x32xf32>
    %327 = vector.broadcast %325 : vector<16x1xf32> to vector<16x32xf32>
    %328 = arith.mulf %327, %326 : vector<16x32xf32>
    %329 = arith.addf %324, %328 : vector<16x32xf32>
    %330 = vector.extract_strided_slice %203 {offsets = [0, 25], sizes = [16, 1], strides = [1, 1]} : vector<16x32xf32> to vector<16x1xf32>
    %331 = vector.extract_strided_slice %13 {offsets = [0, 800], sizes = [16, 32], strides = [1, 1]} : vector<16x1024xf32> to vector<16x32xf32>
    %332 = vector.broadcast %330 : vector<16x1xf32> to vector<16x32xf32>
    %333 = arith.mulf %332, %331 : vector<16x32xf32>
    %334 = arith.addf %329, %333 : vector<16x32xf32>
    %335 = vector.extract_strided_slice %203 {offsets = [0, 26], sizes = [16, 1], strides = [1, 1]} : vector<16x32xf32> to vector<16x1xf32>
    %336 = vector.extract_strided_slice %13 {offsets = [0, 832], sizes = [16, 32], strides = [1, 1]} : vector<16x1024xf32> to vector<16x32xf32>
    %337 = vector.broadcast %335 : vector<16x1xf32> to vector<16x32xf32>
    %338 = arith.mulf %337, %336 : vector<16x32xf32>
    %339 = arith.addf %334, %338 : vector<16x32xf32>
    %340 = vector.extract_strided_slice %203 {offsets = [0, 27], sizes = [16, 1], strides = [1, 1]} : vector<16x32xf32> to vector<16x1xf32>
    %341 = vector.extract_strided_slice %13 {offsets = [0, 864], sizes = [16, 32], strides = [1, 1]} : vector<16x1024xf32> to vector<16x32xf32>
    %342 = vector.broadcast %340 : vector<16x1xf32> to vector<16x32xf32>
    %343 = arith.mulf %342, %341 : vector<16x32xf32>
    %344 = arith.addf %339, %343 : vector<16x32xf32>
    %345 = vector.extract_strided_slice %203 {offsets = [0, 28], sizes = [16, 1], strides = [1, 1]} : vector<16x32xf32> to vector<16x1xf32>
    %346 = vector.extract_strided_slice %13 {offsets = [0, 896], sizes = [16, 32], strides = [1, 1]} : vector<16x1024xf32> to vector<16x32xf32>
    %347 = vector.broadcast %345 : vector<16x1xf32> to vector<16x32xf32>
    %348 = arith.mulf %347, %346 : vector<16x32xf32>
    %349 = arith.addf %344, %348 : vector<16x32xf32>
    %350 = vector.extract_strided_slice %203 {offsets = [0, 29], sizes = [16, 1], strides = [1, 1]} : vector<16x32xf32> to vector<16x1xf32>
    %351 = vector.extract_strided_slice %13 {offsets = [0, 928], sizes = [16, 32], strides = [1, 1]} : vector<16x1024xf32> to vector<16x32xf32>
    %352 = vector.broadcast %350 : vector<16x1xf32> to vector<16x32xf32>
    %353 = arith.mulf %352, %351 : vector<16x32xf32>
    %354 = arith.addf %349, %353 : vector<16x32xf32>
    %355 = vector.extract_strided_slice %203 {offsets = [0, 30], sizes = [16, 1], strides = [1, 1]} : vector<16x32xf32> to vector<16x1xf32>
    %356 = vector.extract_strided_slice %13 {offsets = [0, 960], sizes = [16, 32], strides = [1, 1]} : vector<16x1024xf32> to vector<16x32xf32>
    %357 = vector.broadcast %355 : vector<16x1xf32> to vector<16x32xf32>
    %358 = arith.mulf %357, %356 : vector<16x32xf32>
    %359 = arith.addf %354, %358 : vector<16x32xf32>
    %360 = vector.extract_strided_slice %203 {offsets = [0, 31], sizes = [16, 1], strides = [1, 1]} : vector<16x32xf32> to vector<16x1xf32>
    %361 = vector.extract_strided_slice %13 {offsets = [0, 992], sizes = [16, 32], strides = [1, 1]} : vector<16x1024xf32> to vector<16x32xf32>
    %362 = vector.broadcast %360 : vector<16x1xf32> to vector<16x32xf32>
    %363 = arith.mulf %362, %361 : vector<16x32xf32>
    %364 = arith.addf %359, %363 : vector<16x32xf32>
    %cst_33 = arith.constant dense<0.000000e+00> : vector<8x32xf32>
    %365 = tpu.matmul %33, %364, %cst_33 {dimension_numbers = #tpu.dot_dimension_numbers<[1], [0], [0], [1], [0, 0, 1, 1], [], []>} : vector<8x16xf32>, vector<16x32xf32>, vector<8x32xf32> -> vector<8x32xf32>
    %366 = vector.broadcast %202 : vector<1x32xf32> to vector<8x32xf32>
    %367 = arith.addf %365, %366 : vector<8x32xf32>
    %cst_34 = arith.constant 0.000000e+00 : f32
    %368 = vector.broadcast %cst_34 : f32 to vector<8x32xf32>
    %369 = arith.maximumf %367, %368 : vector<8x32xf32>
    %370 = tpu.iota {dimensions = array<i32: 1>} : vector<8x8xi32>
    %c0_35 = arith.constant 0 : index
    %c0_36 = arith.constant 0 : index
    %371 = vector.load %arg2[%c0_35, %c0_36] : memref<8x1xi32, #tpu.memory_space<vmem>>, vector<8x1xi32>
    %372 = vector.broadcast %371 : vector<8x1xi32> to vector<8x8xi32>
    %373 = arith.cmpi eq, %370, %372 : vector<8x8xi32>
    %cst_37 = arith.constant 1.000000e+00 : f32
    %cst_38 = arith.constant 0.000000e+00 : f32
    %374 = vector.broadcast %cst_37 : f32 to vector<8x8xf32>
    %375 = vector.broadcast %cst_38 : f32 to vector<8x8xf32>
    %376 = arith.select %373, %374, %375 : vector<8x8xi1>, vector<8x8xf32>
    %377 = tpu.iota {dimensions = array<i32: 1>} : vector<8x8xi32>
    %c0_39 = arith.constant 0 : index
    %c0_40 = arith.constant 0 : index
    %378 = vector.load %arg3[%c0_39, %c0_40] : memref<8x1xi32, #tpu.memory_space<vmem>>, vector<8x1xi32>
    %379 = vector.broadcast %378 : vector<8x1xi32> to vector<8x8xi32>
    %380 = arith.cmpi eq, %377, %379 : vector<8x8xi32>
    %cst_41 = arith.constant 1.000000e+00 : f32
    %cst_42 = arith.constant 0.000000e+00 : f32
    %381 = vector.broadcast %cst_41 : f32 to vector<8x8xf32>
    %382 = vector.broadcast %cst_42 : f32 to vector<8x8xf32>
    %383 = arith.select %380, %381, %382 : vector<8x8xi1>, vector<8x8xf32>
    %cst_43 = arith.constant dense<0.000000e+00> : vector<8x32xf32>
    %384 = tpu.matmul %376, %369, %cst_43 {dimension_numbers = #tpu.dot_dimension_numbers<[1], [0], [0], [1], [0, 0, 1, 1], [], []>} : vector<8x8xf32>, vector<8x32xf32>, vector<8x32xf32> -> vector<8x32xf32>
    %cst_44 = arith.constant dense<0.000000e+00> : vector<8x32xf32>
    %385 = tpu.matmul %383, %369, %cst_44 {dimension_numbers = #tpu.dot_dimension_numbers<[1], [0], [0], [1], [0, 0, 1, 1], [], []>} : vector<8x8xf32>, vector<8x32xf32>, vector<8x32xf32> -> vector<8x32xf32>
    %c0_45 = arith.constant 0 : index
    %c0_46 = arith.constant 0 : index
    %386 = vector.load %arg12[%c0_45, %c0_46] : memref<64x32xf32, #tpu.memory_space<vmem>>, vector<64x32xf32>
    %387 = vector.extract_strided_slice %386 {offsets = [0, 0], sizes = [32, 32], strides = [1, 1]} : vector<64x32xf32> to vector<32x32xf32>
    %cst_47 = arith.constant dense<0.000000e+00> : vector<8x32xf32>
    %388 = tpu.matmul %384, %387, %cst_47 {dimension_numbers = #tpu.dot_dimension_numbers<[1], [0], [0], [1], [0, 0, 1, 1], [], []>} : vector<8x32xf32>, vector<32x32xf32>, vector<8x32xf32> -> vector<8x32xf32>
    %389 = vector.extract_strided_slice %386 {offsets = [32, 0], sizes = [32, 32], strides = [1, 1]} : vector<64x32xf32> to vector<32x32xf32>
    %cst_48 = arith.constant dense<0.000000e+00> : vector<8x32xf32>
    %390 = tpu.matmul %385, %389, %cst_48 {dimension_numbers = #tpu.dot_dimension_numbers<[1], [0], [0], [1], [0, 0, 1, 1], [], []>} : vector<8x32xf32>, vector<32x32xf32>, vector<8x32xf32> -> vector<8x32xf32>
    %391 = arith.addf %388, %390 : vector<8x32xf32>
    %c0_49 = arith.constant 0 : index
    %c0_50 = arith.constant 0 : index
    %392 = vector.load %arg13[%c0_49, %c0_50] : memref<1x32xf32, #tpu.memory_space<vmem>>, vector<1x32xf32>
    %393 = vector.broadcast %392 : vector<1x32xf32> to vector<8x32xf32>
    %394 = arith.addf %391, %393 : vector<8x32xf32>
    %cst_51 = arith.constant 0.000000e+00 : f32
    %395 = vector.broadcast %cst_51 : f32 to vector<8x32xf32>
    %396 = arith.maximumf %394, %395 : vector<8x32xf32>
    %c0_52 = arith.constant 0 : index
    %c0_53 = arith.constant 0 : index
    %397 = vector.load %arg14[%c0_52, %c0_53] : memref<32x2xf32, #tpu.memory_space<vmem>>, vector<32x2xf32>
    %cst_54 = arith.constant dense<0.000000e+00> : vector<8x2xf32>
    %398 = tpu.matmul %396, %397, %cst_54 {dimension_numbers = #tpu.dot_dimension_numbers<[1], [0], [0], [1], [0, 0, 1, 1], [], []>} : vector<8x32xf32>, vector<32x2xf32>, vector<8x2xf32> -> vector<8x2xf32>
    %c0_55 = arith.constant 0 : index
    %c0_56 = arith.constant 0 : index
    %399 = vector.load %arg15[%c0_55, %c0_56] : memref<1x2xf32, #tpu.memory_space<vmem>>, vector<1x2xf32>
    %400 = vector.broadcast %399 : vector<1x2xf32> to vector<8x2xf32>
    %401 = arith.addf %398, %400 : vector<8x2xf32>
    %c0_57 = arith.constant 0 : index
    %c0_58 = arith.constant 0 : index
    %402 = vector.load %arg16[%c0_57, %c0_58] : memref<8x2xf32, #tpu.memory_space<vmem>>, vector<8x2xf32>
    tpu.vector_store %arg16[%c0_57, %c0_58], %401 {strides = array<i32>} : memref<8x2xf32, #tpu.memory_space<vmem>>, vector<8x2xf32>,
    return
  }
}

</mosaic_0001>

<bundles_post_ra>
// kernel: tpu_custom_call.1
= control target key start
LH: loop header
LB: loop body
LE: loop exit
PB: predicated region body
PF: predicated region fallthrough
CT: control target
= control target key end

     0   :  { %vm66_vm0 = vcmask 1043456   ;;  %vm62_vm1 = vcmask 31744   ;;  %v3932_v0 = vmov 0.0   ;;  %vm2796_vm2 = vmmov 0   ;;  %s2830_s27 = smov 32   ;;  %s3853_s6 = inlined_call_operand.vmem [shape: f32[4,32], index: 6, kind: input, shape index: {}]   ;;  %s3854_s4 = inlined_call_operand.vmem [shape: f32[8,4], index: 4, kind: input, shape index: {}]   ;;  %s3855_s0 = inlined_call_operand.vmem [shape: s32[16,1], index: 0, kind: input, shape index: {}]   ;;  %s3856_s8 = inlined_call_operand.vmem [shape: f32[4,1024], index: 8, kind: input, shape index: {}]   ;;  %s3857_s5 = inlined_call_operand.vmem [shape: f32[16,4], index: 5, kind: input, shape index: {}]   ;;  %s3858_s7 = inlined_call_operand.vmem [shape: f32[1,32], index: 7, kind: input, shape index: {}]   ;;  %s3859_s9 = inlined_call_operand.vmem [shape: f32[1,1024], index: 9, kind: input, shape index: {}]   ;;  %s3860_s1 = inlined_call_operand.vmem [shape: s32[1,16], index: 1, kind: input, shape index: {}]   ;;  %s3861_s10 = inlined_call_operand.vmem [shape: f32[1,32], index: 10, kind: input, shape index: {}]   ;;  %s3862_s3 = inlined_call_operand.vmem [shape: s32[8,1], index: 3, kind: input, shape index: {}]   ;;  %s3863_s2 = inlined_call_operand.vmem [shape: s32[8,1], index: 2, kind: input, shape index: {}]   ;;  %s3864_s11 = inlined_call_operand.vmem [shape: f32[1,32], index: 11, kind: input, shape index: {}]   ;;  %s3865_s12 = inlined_call_operand.vmem [shape: f32[64,32], index: 12, kind: input, shape index: {}]   ;;  %s3866_s14 = inlined_call_operand.vmem [shape: f32[32,2], index: 14, kind: input, shape index: {}]   ;;  %s3867_s13 = inlined_call_operand.vmem [shape: f32[1,32], index: 13, kind: input, shape index: {}]   ;;  %s3868_s15 = inlined_call_operand.vmem [shape: f32[1,2], index: 15, kind: input, shape index: {}]   ;;  %s3869_s16 = inlined_call_operand.vmem [shape: f32[8,2], index: 16, kind: output, shape index: {}]  }
   0x1   :  { %3944 = sst [smem:[#allocation7_spill]] %s3853_s6  ;;  %2524 = vmatprep.subr.mxu0 %v3932_v0  ;;  %2526 = vmatprep.mubr.msk.f32.mxu0 %vm2796_vm2, %v3932_v0  ;;  %v53_v2 = vld [vmem:[%s3854_s4] sm:$0xff]  ;;  %v3872_v4 = vmov 0   ;;  %v144_v7 = vld [vmem:[%s3856_s8 + $0x10] sm:$0xff]  ;;  %v545_v8 = vld [vmem:[%s3855_s0 + $0x8] sm:$0xff]  ;;  %v3909_v16 = vmov 1   ;;  %v148_v18 = vlaneseq }
   0x2   :  { %s3945_s23 = sld [smem:[#allocation7_spill]]  ;;  %v544_v3 = vld [vmem:[%s3855_s0] sm:$0xff]  ;;  %2658 = vset.pattern.permute.xlu0 %v3872_v4  ;;  %282 = vmatprep.mubr.f32.mxu1 %v3932_v0  ;;  %v194_v10 = vcombine.high %v144_v7, %v144_v7  ;;  %v141_v11 = vld [vmem:[%s3857_s5 + $0x8] sm:$0xff]  ;;  %v145_v13 = vld [vmem:[%s3856_s8 + $0x18] sm:$0xff]  ;;  %v3930_v17 = vmov 3   ;;  %vm573_vm3 = vcmask 64512  }
   0x3   :  { %v142_v5 = vld [vmem:[%s3856_s8] sm:$0xff]  ;;  %547 = vperm.xlu0 %2658, %v544_v3   ;;  %v143_v12 = vld [vmem:[%s3856_s8 + $0x8] sm:$0xff]  ;;  %v195_v15 = vcombine.high %v145_v13, %v145_v13  ;;  %2659 = vset.pattern.permute.xlu1 %v3909_v16  ;;  %v2982_v19 = vand.u32 127, %v148_v18  ;;  %v2987_v22 = vshrl.u32 %v148_v18, 7  ;;  %v3922_v49 = vmov 7  }
   0x4   :  { %v192_v6 = vcombine.high %v142_v5, %v142_v5  ;;  %v140_v9 = vld [vmem:[%s3857_s5] sm:$0xff]  ;;  %v193_v14 = vcombine.high %v143_v12, %v143_v12  ;;  %v3908_v50 = vmov 2   ;;  %v3914_v54 = vmov 11  }
   0x5   :  { %3946 = vst [vmem:[#allocation2_spill] sm:$0xff] %v2982_v19  ;;  %v150_v23 = vsub.s32 0, %v2987_v22  ;;  %v2456_v24 = vld [vmem:[%s3858_s7] ss:$0 sm:$0xff]  ;;  %v166_v35 = vsub.s32 4, %v2987_v22  ;;  %v158_v46 = vsub.s32 2, %v2987_v22 }
   0x6   :  { %2459 = vmatprep.subr.msk.mxu1 %vm66_vm0, %v192_v6  ;;  %v2996_v26 = vld [vmem:[%s3859_s9] sm:$0xff]  ;;  %v3928_v55 = vmov 5   ;;  %v3902_v57 = vmov 15   ;;  %v3926_v58 = vmov 6   ;;  %v3886_v59 = vmov 19   ;;  %s2828_s7 = smov 96  }
   0x7   :  { %2460 = vmatpush1.msk.msra.mxu1 %vm66_vm0, %v142_v5  ;;  %550 = vperm.xlu0 %2658, %v545_v8   ;;  %v3000_v30 = vrot.slane %v2996_v26, %v150_v23  ;;  %v3019_v38 = vrot.slane %v2996_v26, %v166_v35  ;;  %v3042_v51 = vrot.slane %v2996_v26, %v158_v46  ;;  %v3924_v60 = vmov 9   ;;  %s2829_s9 = smov 64  }
   0x8   :  { %v54_v1 = vld [vmem:[%s3945_s23] sm:$0xf]  ;;  %2461 = vmatmul.mubr.msk.f32.vlgmr.msra.gmra.mrb[0].mxu1 %vm62_vm1, %v140_v9  ;;  %2467 = vmatprep.subr.msk.mxu1 %vm66_vm0, %v194_v10  ;;  %v3880_v63 = vmov 23   ;;  %v3884_v3 = vmov 27   ;;  %v3920_v5 = vmov 13   ;;  %v3910_v8 = vmov 14  }
   0x9   :  { %2525 = vmatpush3.msk.msra.mxu0 %vm66_vm0, %v54_v1  ;;  %288 = vmatprep.mubr.f32.mxu1 %v3932_v0  ;;  %v3918_v1 = vmov 10   ;;  %v3916_v10 = vmov 17   ;;  %v3906_v18 = vmov 25   ;;  %v3894_v23 = vmov 31  }
   0xa   :  { %2527 = vmatmul.mubr.msk.f32.vlgmr.msra.gmra.mrb[0].mxu0 %vm62_vm1, %v53_v2  ;;  %2468 = vmatpush1.msk.msra.mxu1 %vm66_vm0, %v144_v7  ;;  %v3890_v7 = vmov 30   ;;  %vm565_vm7 = vcmask 130048   ;;  %vm2210_vm10 = vcmask 261120   ;;  %vm2450_vm11 = vcmask 15360  }
   0xb   :  { %359 = vmatprep.mubr.f32.mxu0 %v3932_v0  ;;  %2463 = vmatprep.subr.msk.mxu0 %vm66_vm0, %v193_v14  ;;  %v3912_v14 = vmov 21  }
   0xc   :  { %2462 = vmatmul.mubr.msk.f32.gmra.mrb[2].mxu1 %vm62_vm1, %v141_v11  ;;  %2464 = vmatpush1.msk.msra.mxu0 %vm66_vm0, %v143_v12  ;;  %v3888_v12 = vmov 18  }
   0xd   :  { %436 = vmatprep.mubr.f32.mxu1 %v3932_v0  ;;  %2471 = vmatprep.subr.msk.mxu0 %vm66_vm0, %v195_v15  ;;  %v3878_v15 = vmov 22  }
   0xe   :  { %2465 = vmatmul.mubr.msk.f32.vlgmr.msra.gmra.mrb[2].mxu0 %vm62_vm1, %v140_v9  ;;  %2661 = vset.pattern.permute.xlu0 %v3930_v17 }
   0xf   :  { %365 = vmatprep.mubr.f32.mxu0 %v3932_v0  ;;  %2472 = vmatpush1.msk.msra.mxu0 %vm66_vm0, %v145_v13  ;;  %v3900_v13 = vmov 24  }
  0x10   :  { %2469 = vmatmul.mubr.msk.f32.vlgmr.msra.gmra.mrb[4].mxu1 %vm62_vm1, %v140_v9 }
  0x11   :  { %442 = vmatprep.mubr.f32.mxu1 %v3932_v0 }
  0x12   :  { %2466 = vmatmul.mubr.msk.f32.gmra.mrb[4].mxu0 %vm62_vm1, %v141_v11 }
  0x13   :  { %513 = vmatprep.mubr.f32.mxu0 %v3932_v0 }
  0x14   :  { %2470 = vmatmul.mubr.msk.f32.gmra.mrb[6].mxu1 %vm62_vm1, %v141_v11 }
  0x16   :  { %2473 = vmatmul.mubr.msk.f32.vlgmr.msra.gmra.mrb[6].mxu0 %vm62_vm1, %v140_v9  ;;  %v3896_v9 = vmov 8  }
  0x17   :  { %519 = vmatprep.mubr.f32.mxu0 %v3932_v0 }
  0x1a   :  { %2474 = vmatmul.mubr.msk.f32.gmra.mrb[8].mxu0 %vm62_vm1, %v141_v11  ;;  %v3898_v11 = vmov 16  }
  0x1b   :  { %2538 = vmatprep.mubr.msk.f32.mxu0 %vm2796_vm2, %v3932_v0 }
  0x82   :  { %v548_v20 = vpop.permute.xlu0 %547 }
  0x83   :  { %vm552_vm4 = vcmp.eq.s32.totalorder %v2982_v19, %v548_v20  ;;  %v3874_v20 = vmov 26  }
  0x84   :  { %v554_v21 = vsel %vm552_vm4, 1.0, %v3932_v0 }
  0x85   :  { %2531 = vmatprep.mubr.msk.f32.mxu1 %vm573_vm3, %v554_v21 }
  0x86   :  { %v551_v25 = vpop.permute.xlu0 %550 }
  0x87   :  { %vm553_vm5 = vcmp.eq.s32.totalorder %v2982_v19, %v551_v25  ;;  %v3882_v25 = vmov 12  }
  0x88   :  { %v3003_v31 = vsel %vm553_vm5, 1.0, %v3932_v0 }
  0x89   :  { %3947 = vst [vmem:[#allocation3_spill] sm:$0xff] %v3003_v31 }
  0xdb   :  { %v284_v32 = vpop.f32.mrb[0].mxu1 }
  0xdc   :  { %v3008_v33 = vadd.f32 %v284_v32, %v3000_v30  ;;  %v3010_v34 = vpop.f32.mrb[1].mxu1 }
  0xdd   :  { %v136_v27 = vpop.f32.mrb[0].mxu0 }
  0xde   :  { %v137_v28 = vadd.f32 %v2456_v24, %v136_v27  ;;  %v2528_v29 = vpop.f32.mrb[1].mxu0  ;;  %v3870_v24 = vmov 4   ;;  %v3876_v27 = vmov 20  }
  0xdf   :  { %v3014_v36 = vpop.f32.mrb[2].mxu1 }
  0xe0   :  { %2529 = vmatprep.subr.mxu1 %v137_v28  ;;  %v3016_v37 = vpop.f32.mrb[3].mxu1 }
  0xe1   :  { %2530 = vmatpush3.msra.mxu1 %v137_v28  ;;  %v361_v47 = vpop.f32.mrb[2].mxu0  ;;  %v291_v28 = vadd.f32 %v3014_v36, %v3000_v30 }
  0xe2   :  { %2532 = vmatmul.mubr.msk.f32.vlgmr.msra.gmra.mrb[8].mxu1 %vm573_vm3, %v3003_v31  ;;  %v3037_v48 = vpop.f32.mrb[3].mxu0  ;;  %v3049_v53 = vadd.f32 %v361_v47, %v3042_v51 }
  0xe3   :  { %2543 = vmatprep.mubr.msk.f32.mxu1 %vm573_vm3, %v554_v21  ;;  %v438_v39 = vpop.f32.mrb[4].mxu1  ;;  %v3892_v21 = vmov 29   ;;  %v3151_v29 = vmax.f32 %v291_v28, 0.0 }
  0xe4   :  { %v3022_v40 = vadd.f32 %v438_v39, %v3019_v38  ;;  %v3024_v41 = vpop.f32.mrb[5].mxu1 }
  0xe5   :  { %v3046_v52 = vpop.f32.mrb[4].mxu0 }
  0xe6   :  { %v3055_v56 = vpop.f32.mrb[5].mxu0 }
  0xe7   :  { %v3026_v42 = vpop.f32.mrb[6].mxu1 }
  0xe8   :  { %v3028_v43 = vpop.f32.mrb[7].mxu1 }
  0xe9   :  { %v3065_v61 = vpop.f32.mrb[6].mxu0 }
  0xea   :  { %v3067_v62 = vpop.f32.mrb[7].mxu0 }
  0xed   :  { %v3073_v2 = vpop.f32.mrb[8].mxu0 }
  0xee   :  { %v3079_v6 = vpop.f32.mrb[9].mxu0 }
 0x1b5   :  { %v3030_v44 = vpop.f32.mrb[8].mxu1 }
 0x1b6   :  { %714 = vperm.xlu0 %2661, %v3030_v44   ;;  %674 = vperm.xlu1 %2659, %v3030_v44   ;;  %v3034_v45 = vpop.f32.mrb[9].mxu1 }
 0x1ba   :  { %2664 = vset.pattern.permute.xlu0 %v3922_v49  ;;  %2660 = vset.pattern.permute.xlu1 %v3908_v50 }
 0x1bb   :  { %786 = vperm.xlu0 %2664, %v3030_v44   ;;  %694 = vperm.xlu1 %2660, %v3030_v44  }
 0x1bf   :  { %2667 = vset.pattern.permute.xlu0 %v3914_v54  ;;  %2662 = vset.pattern.permute.xlu1 %v3928_v55 }
 0x1c0   :  { %858 = vperm.xlu0 %2667, %v3030_v44   ;;  %746 = vperm.xlu1 %2662, %v3030_v44  }
 0x1c4   :  { %2670 = vset.pattern.permute.xlu0 %v3902_v57  ;;  %2663 = vset.pattern.permute.xlu1 %v3926_v58 }
 0x1c5   :  { %930 = vperm.xlu0 %2670, %v3030_v44   ;;  %766 = vperm.xlu1 %2663, %v3030_v44  }
 0x1c9   :  { %2673 = vset.pattern.permute.xlu0 %v3886_v59  ;;  %2665 = vset.pattern.permute.xlu1 %v3924_v60 }
 0x1ca   :  { %1002 = vperm.xlu0 %2673, %v3030_v44   ;;  %818 = vperm.xlu1 %2665, %v3030_v44  }
 0x1ce   :  { %2676 = vset.pattern.permute.xlu0 %v3880_v63  ;;  %2666 = vset.pattern.permute.xlu1 %v3918_v1 }
 0x1cf   :  { %1074 = vperm.xlu0 %2676, %v3030_v44   ;;  %838 = vperm.xlu1 %2666, %v3030_v44  }
 0x1d3   :  { %2679 = vset.pattern.permute.xlu0 %v3884_v3  ;;  %2668 = vset.pattern.permute.xlu1 %v3920_v5 }
 0x1d4   :  { %1146 = vperm.xlu0 %2679, %v3030_v44   ;;  %890 = vperm.xlu1 %2668, %v3030_v44  }
 0x1d8   :  { %2682 = vset.pattern.permute.xlu0 %v3890_v7  ;;  %2669 = vset.pattern.permute.xlu1 %v3910_v8 }
 0x1d9   :  { %1198 = vperm.xlu0 %2682, %v3030_v44   ;;  %910 = vperm.xlu1 %2669, %v3030_v44  }
 0x1dd   :  { %2685 = vset.pattern.permute.xlu0 %v3896_v9  ;;  %2671 = vset.pattern.permute.xlu1 %v3916_v10 }
 0x1de   :  { %806 = vperm.xlu0 %2685, %v3030_v44   ;;  %962 = vperm.xlu1 %2671, %v3030_v44  }
 0x1e2   :  { %2687 = vset.pattern.permute.xlu0 %v3898_v11  ;;  %2672 = vset.pattern.permute.xlu1 %v3888_v12 }
 0x1e3   :  { %950 = vperm.xlu0 %2687, %v3030_v44   ;;  %982 = vperm.xlu1 %2672, %v3030_v44  }
 0x1e7   :  { %2689 = vset.pattern.permute.xlu0 %v3900_v13  ;;  %2674 = vset.pattern.permute.xlu1 %v3912_v14 }
 0x1e8   :  { %1094 = vperm.xlu0 %2689, %v3030_v44   ;;  %1034 = vperm.xlu1 %2674, %v3030_v44  }
 0x1ec   :  { %2691 = vset.pattern.permute.xlu0 %v3908_v50  ;;  %2675 = vset.pattern.permute.xlu1 %v3878_v15 }
 0x1ed   :  { %1054 = vperm.xlu1 %2675, %v3030_v44   ;;  %690 = vperm.xlu0 %2691, %v3034_v45  }
 0x1f1   :  { %2677 = vset.pattern.permute.xlu1 %v3906_v18  ;;  %2694 = vset.pattern.permute.xlu0 %v3926_v58 }
 0x1f2   :  { %1106 = vperm.xlu1 %2677, %v3030_v44   ;;  %762 = vperm.xlu0 %2694, %v3034_v45  }
 0x1f6   :  { %2678 = vset.pattern.permute.xlu1 %v3874_v20  ;;  %2697 = vset.pattern.permute.xlu0 %v3918_v1 }
 0x1f7   :  { %1126 = vperm.xlu1 %2678, %v3030_v44   ;;  %834 = vperm.xlu0 %2697, %v3034_v45  }
 0x1fb   :  { %2680 = vset.pattern.permute.xlu1 %v3892_v21  ;;  %2700 = vset.pattern.permute.xlu0 %v3910_v8 }
 0x1fc   :  { %1178 = vperm.xlu1 %2680, %v3030_v44   ;;  %906 = vperm.xlu0 %2700, %v3034_v45  }
 0x200   :  { %2681 = vset.pattern.permute.xlu1 %v3872_v4  ;;  %2703 = vset.pattern.permute.xlu0 %v3888_v12 }
 0x201   :  { %662 = vperm.xlu1 %2681, %v3030_v44   ;;  %978 = vperm.xlu0 %2703, %v3034_v45  }
 0x205   :  { %2683 = vset.pattern.permute.xlu1 %v3894_v23  ;;  %2706 = vset.pattern.permute.xlu0 %v3878_v15 }
 0x206   :  { %1218 = vperm.xlu1 %2683, %v3030_v44   ;;  %1050 = vperm.xlu0 %2706, %v3034_v45  }
 0x20a   :  { %2684 = vset.pattern.permute.xlu1 %v3870_v24  ;;  %2709 = vset.pattern.permute.xlu0 %v3874_v20 }
 0x20b   :  { %734 = vperm.xlu1 %2684, %v3030_v44   ;;  %1122 = vperm.xlu0 %2709, %v3034_v45  }
 0x20f   :  { %2686 = vset.pattern.permute.xlu1 %v3882_v25  ;;  %2712 = vset.pattern.permute.xlu0 %v3872_v4 }
 0x210   :  { %878 = vperm.xlu1 %2686, %v3030_v44   ;;  %657 = vperm.xlu0 %2712, %v3034_v45  }
 0x214   :  { %2688 = vset.pattern.permute.xlu1 %v3876_v27  ;;  %2715 = vset.pattern.permute.xlu0 %v3870_v24 }
 0x215   :  { %1022 = vperm.xlu1 %2688, %v3030_v44   ;;  %730 = vperm.xlu0 %2715, %v3034_v45  }
 0x219   :  { %2690 = vset.pattern.permute.xlu1 %v3909_v16  ;;  %2717 = vset.pattern.permute.xlu0 %v3882_v25 }
 0x21a   :  { %874 = vperm.xlu0 %2717, %v3034_v45   ;;  %670 = vperm.xlu1 %2690, %v3034_v45  }
 0x21e   :  { %2719 = vset.pattern.permute.xlu0 %v3876_v27  ;;  %2692 = vset.pattern.permute.xlu1 %v3930_v17 }
 0x21f   :  { %1018 = vperm.xlu0 %2719, %v3034_v45   ;;  %710 = vperm.xlu1 %2692, %v3034_v45  }
 0x223   :  { %2693 = vset.pattern.permute.xlu1 %v3928_v55 }
 0x224   :  { %742 = vperm.xlu1 %2693, %v3034_v45  }
 0x228   :  { %2695 = vset.pattern.permute.xlu1 %v3922_v49 }
 0x229   :  { %782 = vperm.xlu1 %2695, %v3034_v45  }
 0x22d   :  { %2696 = vset.pattern.permute.xlu1 %v3924_v60 }
 0x22e   :  { %814 = vperm.xlu1 %2696, %v3034_v45  }
 0x232   :  { %2698 = vset.pattern.permute.xlu1 %v3914_v54 }
 0x233   :  { %854 = vperm.xlu1 %2698, %v3034_v45  }
 0x235   :  { %v715_v32 = vpop.permute.xlu0 %714  ;;  %v675_v35 = vpop.permute.xlu1 %674 }
 0x236   :  { %v678_v39 = vmul.f32 %v675_v35, %v3151_v29  ;;  %v718_v47 = vmul.f32 %v715_v32, %v3151_v29 }
 0x237   :  { %2699 = vset.pattern.permute.xlu1 %v3920_v5 }
 0x238   :  { %683 = vrot.lane.b32.xlu0 %v678_v39, %s2828_s7  ;;  %886 = vperm.xlu1 %2699, %v3034_v45   ;;  %v368_v39 = vadd.f32 %v3046_v52, %v3042_v51  ;;  %v3904_v51 = vmov 28  }
 0x239   :  { %2721 = vset.pattern.permute.xlu0 %v3904_v51 }
 0x23a   :  { %v3157_v46 = vpop.permute.xlu0 %786  ;;  %v695_v30 = vpop.permute.xlu1 %694  ;;  %v3177_v32 = vmax.f32 %v368_v39, 0.0 }
 0x23b   :  { %v698_v36 = vmul.f32 %v695_v30, %v3151_v29 }
 0x23c   :  { %2701 = vset.pattern.permute.xlu1 %v3902_v57 }
 0x23d   :  { %703 = vrot.lane.b32.xlu0 %v698_v36, %s2829_s9  ;;  %926 = vperm.xlu1 %2701, %v3034_v45  }
 0x23f   :  { %v859_v28 = vpop.permute.xlu0 %858  ;;  %v3164_v35 = vpop.permute.xlu1 %746 }
 0x241   :  { %723 = vrot.lane.b32.xlu0 %v718_v47, %s2830_s27  ;;  %2702 = vset.pattern.permute.xlu1 %v3916_v10 }
 0x242   :  { %958 = vperm.xlu1 %2702, %v3034_v45  }
 0x244   :  { %v3171_v30 = vpop.permute.xlu0 %930  ;;  %v3173_v36 = vpop.permute.xlu1 %766 }
 0x246   :  { %2704 = vset.pattern.permute.xlu1 %v3886_v59  ;;  %v154_v59 = vsub.s32 1, %v2987_v22 }
 0x247   :  { %998 = vperm.xlu1 %2704, %v3034_v45  }
 0x248   :  { %v155_v12 = vrot.slane %v2996_v26, %v154_v59 }
 0x249   :  { %v1003_v24 = vpop.permute.xlu0 %1002  ;;  %v819_v4 = vpop.permute.xlu1 %818 }
 0x24a   :  { %v822_v47 = vmul.f32 %v819_v4, %v3177_v32  ;;  %v862_v4 = vmul.f32 %v859_v28, %v3177_v32 }
 0x24b   :  { %2705 = vset.pattern.permute.xlu1 %v3912_v14 }
 0x24c   :  { %827 = vrot.lane.b32.xlu0 %v822_v47, %s2828_s7  ;;  %1030 = vperm.xlu1 %2705, %v3034_v45  }
 0x24e   :  { %v3184_v52 = vpop.permute.xlu0 %1074  ;;  %v839_v20 = vpop.permute.xlu1 %838 }
 0x24f   :  { %v842_v27 = vmul.f32 %v839_v20, %v3177_v32  ;;  %v445_v20 = vadd.f32 %v3026_v42, %v3019_v38 }
 0x250   :  { %2707 = vset.pattern.permute.xlu1 %v3880_v63 }
 0x251   :  { %847 = vrot.lane.b32.xlu0 %v842_v27, %s2829_s9  ;;  %1070 = vperm.xlu1 %2707, %v3034_v45   ;;  %v3202_v27 = vmax.f32 %v445_v20, 0.0 }
 0x253   :  { %v3191_v39 = vpop.permute.xlu0 %1146  ;;  %v891_v47 = vpop.permute.xlu1 %890 }
 0x255   :  { %867 = vrot.lane.b32.xlu0 %v862_v4, %s2830_s27  ;;  %2708 = vset.pattern.permute.xlu1 %v3906_v18 }
 0x256   :  { %1102 = vperm.xlu1 %2708, %v3034_v45  }
 0x258   :  { %v3198_v15 = vpop.permute.xlu0 %1198  ;;  %v911_v63 = vpop.permute.xlu1 %910 }
 0x25a   :  { %2710 = vset.pattern.permute.xlu1 %v3884_v3 }
 0x25b   :  { %1142 = vperm.xlu1 %2710, %v3034_v45  }
 0x25d   :  { %v3204_v28 = vpop.permute.xlu0 %806  ;;  %v963_v25 = vpop.permute.xlu1 %962 }
 0x25e   :  { %v966_v4 = vmul.f32 %v963_v25, %v3202_v27  ;;  %v1006_v25 = vmul.f32 %v1003_v24, %v3202_v27 }
 0x25f   :  { %2711 = vset.pattern.permute.xlu1 %v3892_v21 }
 0x260   :  { %971 = vrot.lane.b32.xlu0 %v966_v4, %s2828_s7  ;;  %1174 = vperm.xlu1 %2711, %v3034_v45  }
 0x262   :  { %v3210_v38 = vpop.permute.xlu0 %950  ;;  %v983_v42 = vpop.permute.xlu1 %982 }
 0x263   :  { %v986_v3 = vmul.f32 %v983_v42, %v3202_v27  ;;  %v287_v42 = vadd.f32 %v3010_v34, %v155_v12  ;;  %v293_v34 = vadd.f32 %v3016_v37, %v155_v12 }
 0x264   :  { %2713 = vset.pattern.permute.xlu1 %v3890_v7 }
 0x265   :  { %991 = vrot.lane.b32.xlu0 %v986_v3, %s2829_s9  ;;  %1194 = vperm.xlu1 %2713, %v3034_v45   ;;  %v3231_v24 = vmax.f32 %v287_v42, 0.0  ;;  %v162_v42 = vsub.s32 3, %v2987_v22 }
 0x267   :  { %v3218_v20 = vpop.permute.xlu0 %1094  ;;  %v3220_v4 = vpop.permute.xlu1 %1034 }
 0x269   :  { %1011 = vrot.lane.b32.xlu0 %v1006_v25, %s2830_s27  ;;  %2714 = vset.pattern.permute.xlu1 %v3894_v23 }
 0x26a   :  { %1214 = vperm.xlu1 %2714, %v3034_v45  }
 0x26c   :  { %v3227_v7 = vpop.permute.xlu1 %1054  ;;  %v691_v3 = vpop.permute.xlu0 %690 }
 0x26e   :  { %2716 = vset.pattern.permute.xlu1 %v3896_v9  ;;  %v3243_v9 = vmax.f32 %v293_v34, 0.0 }
 0x26f   :  { %802 = vperm.xlu1 %2716, %v3034_v45  }
 0x270   :  { %v770_v37 = vmul.f32 %v3173_v36, %v3243_v9 }
 0x271   :  { %v3233_v21 = vpop.permute.xlu1 %1106  ;;  %v763_v59 = vpop.permute.xlu0 %762 }
 0x272   :  { %v769_v25 = vmul.f32 %v763_v59, %v3231_v24  ;;  %v750_v59 = vmul.f32 %v3164_v35, %v3243_v9  ;;  %v790_v35 = vmul.f32 %v3157_v46, %v3243_v9 }
 0x273   :  { %2718 = vset.pattern.permute.xlu1 %v3898_v11 }
 0x274   :  { %773 = vrot.lane.b32.xlu0 %v769_v25, %s2829_s9  ;;  %946 = vperm.xlu1 %2718, %v3034_v45   ;;  %v163_v25 = vrot.slane %v2996_v26, %v162_v42 }
 0x276   :  { %v3240_v23 = vpop.permute.xlu1 %1126  ;;  %v370_v34 = vadd.f32 %v3055_v56, %v163_v25 }
 0x278   :  { %2720 = vset.pattern.permute.xlu1 %v3900_v13  ;;  %v3262_v13 = vmax.f32 %v370_v34, 0.0  ;;  %v3281_v34 = vmax.f32 %v3008_v33, 0.0 }
 0x279   :  { %1090 = vperm.xlu1 %2720, %v3034_v45  }
 0x27a   :  { %v894_v42 = vmul.f32 %v891_v47, %v3262_v13  ;;  %v934_v56 = vmul.f32 %v3171_v30, %v3262_v13  ;;  %3948 = vst [vmem:[#allocation4_spill] sm:$0xff] %v3281_v34 }
 0x27b   :  { %v3249_v11 = vpop.permute.xlu1 %1178 }
 0x27d   :  { %755 = vrot.lane.b32.xlu1 %v750_v59, %s2828_s7  ;;  %v914_v59 = vmul.f32 %v911_v63, %v3262_v13  ;;  %v697_v63 = vmul.f32 %v691_v3, %v3281_v34 }
 0x27e   :  { %2722 = vset.pattern.permute.xlu1 %v3904_v51  ;;  %v835_v51 = vpop.permute.xlu0 %834 }
 0x280   :  { %v3256_v12 = vpop.permute.xlu1 %662 }
 0x281   :  { %775 = vrot.lane.b32.xlu1 %v770_v37, %s2829_s9  ;;  %v666_v1 = vmul.f32 %v3256_v12, %v3151_v29 }
 0x285   :  { %v3264_v57 = vpop.permute.xlu1 %1218  ;;  %795 = vrot.lane.b32.xlu1 %v790_v35, %s2830_s27 }
 0x289   :  { %899 = vrot.lane.b32.xlu1 %v894_v42, %s2828_s7 }
 0x28a   :  { %v3269_v36 = vpop.permute.xlu1 %734 }
 0x28b   :  { %v738_v31 = vmul.f32 %v3269_v36, %v3243_v9 }
 0x28d   :  { %919 = vrot.lane.b32.xlu1 %v914_v59, %s2829_s9 }
 0x28f   :  { %v3275_v46 = vpop.permute.xlu1 %878 }
 0x291   :  { %939 = vrot.lane.b32.xlu1 %v934_v56, %s2830_s27  ;;  %v364_v56 = vadd.f32 %v3037_v48, %v163_v25 }
 0x293   :  { %v3292_v18 = vmax.f32 %v364_v56, 0.0  ;;  %v170_v56 = vsub.s32 5, %v2987_v22 }
 0x294   :  { %v3278_v37 = vpop.permute.xlu1 %1022 }
 0x299   :  { %v671_v47 = vpop.permute.xlu1 %670 }
 0x29a   :  { %v677_v35 = vmul.f32 %v671_v47, %v3281_v34 }
 0x29c   :  { %681 = vrot.lane.b32.xlu1 %v677_v35, %s2828_s7  ;;  %v907_v35 = vpop.permute.xlu0 %906 }
 0x29e   :  { %v711_v42 = vpop.permute.xlu1 %710 }
 0x29f   :  { %v717_v30 = vmul.f32 %v711_v42, %v3281_v34  ;;  %v913_v42 = vmul.f32 %v907_v35, %v3292_v18 }
 0x2a0   :  { %701 = vrot.lane.b32.xlu1 %v697_v63, %s2829_s9  ;;  %v3297_v63 = vmax.f32 %v3049_v53, 0.0 }
 0x2a2   :  { %v841_v25 = vmul.f32 %v835_v51, %v3297_v63 }
 0x2a3   :  { %v743_v59 = vpop.permute.xlu1 %742 }
 0x2a4   :  { %721 = vrot.lane.b32.xlu1 %v717_v30, %s2830_s27  ;;  %v749_v33 = vmul.f32 %v743_v59, %v3231_v24 }
 0x2a8   :  { %753 = vrot.lane.b32.xlu1 %v749_v33, %s2828_s7  ;;  %v783_v47 = vpop.permute.xlu1 %782 }
 0x2a9   :  { %v789_v3 = vmul.f32 %v783_v47, %v3231_v24  ;;  %v171_v47 = vrot.slane %v2996_v26, %v170_v56 }
 0x2ab   :  { %793 = vrot.lane.b32.xlu0 %v789_v3, %s2830_s27  ;;  %v447_v35 = vadd.f32 %v3028_v43, %v171_v47  ;;  %v174_v43 = vsub.s32 6, %v2987_v22 }
 0x2ad   :  { %v815_v30 = vpop.permute.xlu1 %814 }
 0x2ae   :  { %v821_v48 = vmul.f32 %v815_v30, %v3297_v63  ;;  %v3313_v30 = vmax.f32 %v447_v35, 0.0  ;;  %v175_v35 = vrot.slane %v2996_v26, %v174_v43  ;;  %v441_v43 = vadd.f32 %v3024_v41, %v171_v47 }
 0x2af   :  { %917 = vrot.lane.b32.xlu0 %v913_v42, %s2829_s9  ;;  %v178_v47 = vsub.s32 7, %v2987_v22 }
 0x2b0   :  { %825 = vrot.lane.b32.xlu1 %v821_v48, %s2828_s7  ;;  %v3317_v48 = vmax.f32 %v3022_v40, 0.0  ;;  %v516_v41 = vadd.f32 %v3065_v61, %v175_v35 }
 0x2b2   :  { %v855_v59 = vpop.permute.xlu1 %854 }
 0x2b3   :  { %v861_v33 = vmul.f32 %v855_v59, %v3297_v63 }
 0x2b4   :  { %845 = vrot.lane.b32.xlu1 %v841_v25, %s2829_s9  ;;  %v1038_v25 = vmul.f32 %v3220_v4, %v3313_v30  ;;  %v1078_v4 = vmul.f32 %v3184_v52, %v3313_v30 }
 0x2b7   :  { %v887_v53 = vpop.permute.xlu1 %886 }
 0x2b8   :  { %865 = vrot.lane.b32.xlu1 %v861_v33, %s2830_s27  ;;  %v893_v3 = vmul.f32 %v887_v53, %v3292_v18  ;;  %v979_v33 = vpop.permute.xlu0 %978  ;;  %v1058_v53 = vmul.f32 %v3227_v7, %v3313_v30 }
 0x2bc   :  { %897 = vrot.lane.b32.xlu1 %v893_v3, %s2828_s7  ;;  %v927_v42 = vpop.permute.xlu1 %926  ;;  %v985_v3 = vmul.f32 %v979_v33, %v3317_v48 }
 0x2bd   :  { %v933_v51 = vmul.f32 %v927_v42, %v3292_v18 }
 0x2bf   :  { %937 = vrot.lane.b32.xlu0 %v933_v51, %s2830_s27  ;;  %v522_v51 = vadd.f32 %v3073_v2, %v175_v35 }
 0x2c1   :  { %v959_v59 = vpop.permute.xlu1 %958  ;;  %v3337_v7 = vmax.f32 %v522_v51, 0.0 }
 0x2c2   :  { %v965_v56 = vmul.f32 %v959_v59, %v3317_v48 }
 0x2c3   :  { %1043 = vrot.lane.b32.xlu0 %v1038_v25, %s2828_s7  ;;  %v1130_v2 = vmul.f32 %v3240_v23, %v3337_v7  ;;  %v1150_v33 = vmul.f32 %v3191_v39, %v3337_v7 }
 0x2c4   :  { %969 = vrot.lane.b32.xlu1 %v965_v56, %s2828_s7  ;;  %v1110_v56 = vmul.f32 %v3233_v21, %v3337_v7 }
 0x2c6   :  { %v999_v40 = vpop.permute.xlu1 %998 }
 0x2c7   :  { %1063 = vrot.lane.b32.xlu0 %v1058_v53, %s2829_s9  ;;  %v1005_v42 = vmul.f32 %v999_v40, %v3317_v48 }
 0x2c8   :  { %989 = vrot.lane.b32.xlu1 %v985_v3, %s2829_s9  ;;  %v3350_v3 = vmax.f32 %v441_v43, 0.0 }
 0x2cb   :  { %1083 = vrot.lane.b32.xlu0 %v1078_v4, %s2830_s27  ;;  %v1031_v25 = vpop.permute.xlu1 %1030 }
 0x2cc   :  { %1009 = vrot.lane.b32.xlu1 %v1005_v42, %s2830_s27  ;;  %v1037_v21 = vmul.f32 %v1031_v25, %v3350_v3  ;;  %v2475_v42 = vld [vmem:[%s3860_s1] ss:$0 sm:$0xff] }
 0x2cd   :  { %vm563_vm6 = vcmp.eq.s32.totalorder %v2987_v22, %v2475_v42 }
 0x2ce   :  { %v3370_v43 = vsel %vm563_vm6, 1.0, %v3932_v0 }
 0x2cf   :  { %1162 = vperm.xlu0 %2721, %v3034_v45   ;;  %v1051_v45 = vpop.permute.xlu0 %1050  ;;  %3949 = vst [vmem:[#allocation5_spill] sm:$0xff] %v3370_v43 }
 0x2d0   :  { %v1071_v59 = vpop.permute.xlu1 %1070  ;;  %v1057_v4 = vmul.f32 %v1051_v45, %v3350_v3 }
 0x2d1   :  { %v1077_v25 = vmul.f32 %v1071_v59, %v3350_v3 }
 0x2d3   :  { %1115 = vrot.lane.b32.xlu0 %v1110_v56, %s2828_s7  ;;  %v1123_v40 = vpop.permute.xlu0 %1122  ;;  %v3363_v56 = vmax.f32 %v516_v41, 0.0 }
 0x2d4   :  { %2723 = vset.pattern.permute.xlu0 %v3909_v16 }
 0x2d5   :  { %v1103_v52 = vpop.permute.xlu1 %1102  ;;  %v1129_v59 = vmul.f32 %v1123_v40, %v3363_v56 }
 0x2d6   :  { %v1109_v61 = vmul.f32 %v1103_v52, %v3363_v56 }
 0x2d7   :  { %1135 = vrot.lane.b32.xlu0 %v1130_v2, %s2829_s9  ;;  %v658_v51 = vpop.permute.xlu0 %657  ;;  %v179_v2 = vrot.slane %v2996_v26, %v178_v47  ;;  %v566_v26 = vsel %vm565_vm7, %v3370_v43, 0.0 }
 0x2da   :  { %v1143_v53 = vpop.permute.xlu1 %1142 }
 0x2db   :  { %1155 = vrot.lane.b32.xlu0 %v1150_v33, %s2830_s27  ;;  %v524_v33 = vadd.f32 %v3079_v6, %v179_v2  ;;  %v731_v45 = vpop.permute.xlu0 %730 }
 0x2dc   :  { %v737_v58 = vmul.f32 %v731_v45, %v3231_v24 }
 0x2dd   :  { %v3379_v22 = vmax.f32 %v524_v33, 0.0 }
 0x2df   :  { %1041 = vrot.lane.b32.xlu0 %v1037_v21, %s2828_s7  ;;  %v1175_v23 = vpop.permute.xlu1 %1174  ;;  %v1182_v52 = vmul.f32 %v3249_v11, %v3379_v22  ;;  %v1202_v40 = vmul.f32 %v3198_v15, %v3379_v22  ;;  %v1222_v47 = vmul.f32 %v3264_v57, %v3379_v22  ;;  %v518_v11 = vadd.f32 %v3067_v62, %v179_v2 }
 0x2e0   :  { %v1149_v15 = vmul.f32 %v1143_v53, %v3363_v56 }
 0x2e3   :  { %1061 = vrot.lane.b32.xlu0 %v1057_v4, %s2829_s9  ;;  %v3384_v4 = vpop.permute.xlu0 %874 }
 0x2e4   :  { %v1195_v39 = vpop.permute.xlu1 %1194 }
 0x2e7   :  { %1081 = vrot.lane.b32.xlu0 %v1077_v25, %s2830_s27  ;;  %v3391_v41 = vpop.permute.xlu0 %1018 }
 0x2e9   :  { %v1215_v35 = vpop.permute.xlu1 %1214 }
 0x2eb   :  { %1113 = vrot.lane.b32.xlu0 %v1109_v61, %s2828_s7  ;;  %v684_v25 = vpop.permute.xlu0 %683 }
 0x2ec   :  { %v688_v49 = vadd.f32 %v684_v25, %v666_v1  ;;  %v810_v1 = vmul.f32 %v3204_v28, %v3177_v32  ;;  %v882_v28 = vmul.f32 %v3275_v46, %v3262_v13 }
 0x2ee   :  { %v3377_v21 = vpop.permute.xlu1 %802 }
 0x2ef   :  { %1133 = vrot.lane.b32.xlu0 %v1129_v59, %s2829_s9  ;;  %v704_v33 = vpop.permute.xlu0 %703  ;;  %v3401_v59 = vmax.f32 %v518_v11, 0.0  ;;  %v3934_v11 = vmov 0.0|0.0  }
 0x2f0   :  { %567 = vadd.xlane.f32.xlu1 %v566_v26  ;;  %2596 = vmatprep.subr.bf16.mxu0 %v3934_v11  ;;  %v708_v55 = vadd.f32 %v704_v33, %v688_v49  ;;  %v881_v33 = vmul.f32 %v3384_v4, %v3292_v18 }
 0x2f1   :  { %3950 = vst [vmem:[#allocation6_spill] sm:$0xff] %v3401_v59  ;;  %v1201_v62 = vmul.f32 %v1195_v39, %v3401_v59 }
 0x2f3   :  { %1187 = vrot.lane.b32.xlu0 %v1182_v52, %s2828_s7  ;;  %v3387_v6 = vpop.permute.xlu1 %946  ;;  %v724_v57 = vpop.permute.xlu0 %723  ;;  %v1181_v52 = vmul.f32 %v1175_v23, %v3401_v59 }
 0x2f4   :  { %v728_v0 = vadd.f32 %v724_v57, %v708_v55  ;;  %v809_v55 = vmul.f32 %v3377_v21, %v3297_v63 }
 0x2f7   :  { %1207 = vrot.lane.b32.xlu0 %v1202_v40, %s2829_s9  ;;  %v828_v40 = vpop.permute.xlu0 %827 }
 0x2f8   :  { %v3396_v42 = vpop.permute.xlu1 %1090 }
 0x2fb   :  { %1227 = vrot.lane.b32.xlu0 %v1222_v47, %s2830_s27  ;;  %v848_v47 = vpop.permute.xlu0 %847 }
 0x2fc   :  { %v756_v61 = vpop.permute.xlu1 %755 }
 0x300   :  { %v776_v26 = vpop.permute.xlu1 %775 }
 0x301   :  { %1166 = vperm.xlu1 %2722, %v3030_v44   ;;  %v1221_v44 = vmul.f32 %v1215_v35, %v3401_v59  ;;  %v665_v35 = vmul.f32 %v658_v51, %v3281_v34 }
 0x304   :  { %v796_v2 = vpop.permute.xlu1 %795 }
 0x305   :  { %1153 = vrot.lane.b32.xlu1 %v1149_v15, %s2830_s27  ;;  %v868_v15 = vpop.permute.xlu0 %867 }
 0x306   :  { %2724 = vset.pattern.permute.xlu1 %v3908_v50 }
 0x308   :  { %v900_v53 = vpop.permute.xlu1 %899 }
 0x309   :  { %1185 = vrot.lane.b32.xlu1 %v1181_v52, %s2828_s7  ;;  %v3413_v23 = vpop.permute.xlu0 %971 }
 0x30c   :  { %v920_v50 = vpop.permute.xlu1 %919 }
 0x30d   :  { %1205 = vrot.lane.b32.xlu1 %v1201_v62, %s2829_s9  ;;  %v3415_v16 = vpop.permute.xlu0 %991 }
 0x310   :  { %v940_v52 = vpop.permute.xlu1 %939 }
 0x311   :  { %1225 = vrot.lane.b32.xlu1 %v1221_v44, %s2830_s27  ;;  %v3417_v8 = vpop.permute.xlu0 %1011 }
 0x314   :  { %v682_v39 = vpop.permute.xlu1 %681 }
 0x315   :  { %v774_v14 = vpop.permute.xlu0 %773  ;;  %v687_v54 = vadd.f32 %v682_v39, %v665_v35  ;;  %v740_v39 = vadd.f32 %v738_v31, %v728_v0 }
 0x317   :  { %v760_v34 = vadd.f32 %v756_v61, %v740_v39 }
 0x318   :  { %v702_v62 = vpop.permute.xlu1 %701 }
 0x319   :  { %v707_v5 = vadd.f32 %v702_v62, %v687_v54  ;;  %v780_v43 = vadd.f32 %v776_v26, %v760_v34 }
 0x31b   :  { %v800_v54 = vadd.f32 %v796_v2, %v780_v43 }
 0x31c   :  { %v722_v10 = vpop.permute.xlu1 %721 }
 0x31d   :  { %v794_v44 = vpop.permute.xlu0 %793  ;;  %v727_v60 = vadd.f32 %v722_v10, %v707_v5 }
 0x31f   :  { %v739_v11 = vadd.f32 %v737_v58, %v727_v60  ;;  %v812_v58 = vadd.f32 %v810_v1, %v800_v54  ;;  %v953_v54 = vmul.f32 %v3387_v6, %v3317_v48  ;;  %v1025_v6 = vmul.f32 %v3391_v41, %v3350_v3 }
 0x320   :  { %v754_v19 = vpop.permute.xlu1 %753 }
 0x321   :  { %v918_v17 = vpop.permute.xlu0 %917  ;;  %v759_v35 = vadd.f32 %v754_v19, %v739_v11  ;;  %v832_v36 = vadd.f32 %v828_v40, %v812_v58 }
 0x323   :  { %v779_v59 = vadd.f32 %v774_v14, %v759_v35  ;;  %v852_v31 = vadd.f32 %v848_v47, %v832_v36 }
 0x324   :  { %v826_v49 = vpop.permute.xlu1 %825 }
 0x325   :  { %v799_v5 = vadd.f32 %v794_v44, %v779_v59  ;;  %v872_v43 = vadd.f32 %v868_v15, %v852_v31  ;;  %v954_v15 = vmul.f32 %v3210_v38, %v3202_v27  ;;  %v1026_v38 = vmul.f32 %v3278_v37, %v3313_v30 }
 0x327   :  { %v811_v10 = vadd.f32 %v809_v55, %v799_v5  ;;  %v884_v21 = vadd.f32 %v882_v28, %v872_v43 }
 0x328   :  { %v846_v45 = vpop.permute.xlu1 %845 }
 0x329   :  { %v831_v0 = vadd.f32 %v826_v49, %v811_v10  ;;  %v904_v40 = vadd.f32 %v900_v53, %v884_v21 }
 0x32b   :  { %v851_v34 = vadd.f32 %v846_v45, %v831_v0  ;;  %v924_v62 = vadd.f32 %v920_v50, %v904_v40 }
 0x32c   :  { %v866_v14 = vpop.permute.xlu1 %865 }
 0x32d   :  { %v871_v61 = vadd.f32 %v866_v14, %v851_v34  ;;  %v944_v44 = vadd.f32 %v940_v52, %v924_v62 }
 0x32f   :  { %v883_v26 = vadd.f32 %v881_v33, %v871_v61  ;;  %v956_v4 = vadd.f32 %v954_v15, %v944_v44  ;;  %v1097_v61 = vmul.f32 %v3396_v42, %v3363_v56  ;;  %v3951_v15 = vld [vmem:[#allocation6_spill] sm:$0xff] }
 0x330   :  { %v898_v57 = vpop.permute.xlu1 %897 }
 0x331   :  { %v938_v51 = vpop.permute.xlu0 %937  ;;  %v903_v2 = vadd.f32 %v898_v57, %v883_v26  ;;  %v976_v53 = vadd.f32 %v3413_v23, %v956_v4 }
 0x333   :  { %v923_v47 = vadd.f32 %v918_v17, %v903_v2  ;;  %v996_v50 = vadd.f32 %v3415_v16, %v976_v53 }
 0x335   :  { %v1044_v12 = vpop.permute.xlu0 %1043  ;;  %v943_v46 = vadd.f32 %v938_v51, %v923_v47  ;;  %v1016_v10 = vadd.f32 %v3417_v8, %v996_v50  ;;  %v1098_v8 = vmul.f32 %v3218_v20, %v3337_v7 }
 0x336   :  { %v970_v39 = vpop.permute.xlu1 %969 }
 0x337   :  { %v955_v1 = vadd.f32 %v953_v54, %v943_v46  ;;  %v1028_v45 = vadd.f32 %v1026_v38, %v1016_v10  ;;  %v2478_v38 = vld [vmem:[%s3861_s10] ss:$0 sm:$0xff] }
 0x339   :  { %v1064_v60 = vpop.permute.xlu0 %1063  ;;  %v975_v55 = vadd.f32 %v970_v39, %v955_v1  ;;  %v1048_v31 = vadd.f32 %v1044_v12, %v1028_v45 }
 0x33a   :  { %v990_v5 = vpop.permute.xlu1 %989 }
 0x33b   :  { %v995_v58 = vadd.f32 %v990_v5, %v975_v55  ;;  %v1068_v34 = vadd.f32 %v1064_v60, %v1048_v31  ;;  %v3955_v31 = vld [vmem:[#allocation3_spill] sm:$0xff] }
 0x33d   :  { %v1084_v19 = vpop.permute.xlu0 %1083 }
 0x33e   :  { %v1010_v17 = vpop.permute.xlu1 %1009  ;;  %v1088_v43 = vadd.f32 %v1084_v19, %v1068_v34 }
 0x33f   :  { %v1015_v36 = vadd.f32 %v1010_v17, %v995_v58  ;;  %v3952_v58 = vld [vmem:[#allocation5_spill] sm:$0xff] }
 0x340   :  { %v1100_v33 = vadd.f32 %v1098_v8, %v1088_v43  ;;  %v3958_v43 = vmov 6   ;;  %v3960_v8 = vmov 7  }
 0x341   :  { %v1027_v0 = vadd.f32 %v1025_v6, %v1015_v36  ;;  %v3954_v36 = vmov 0.0  }
 0x34e   :  { %v1163_v25 = vpop.permute.xlu0 %1162 }
 0x34f   :  { %v1169_v46 = vmul.f32 %v1163_v25, %v3951_v15  ;;  %v3953_v25 = vmov 0.0|0.0  }
 0x352   :  { %v1116_v59 = vpop.permute.xlu0 %1115 }
 0x353   :  { %v1120_v26 = vadd.f32 %v1116_v59, %v1100_v33  ;;  %v3963_v33 = vmov 17  }
 0x356   :  { %v1136_v11 = vpop.permute.xlu0 %1135 }
 0x357   :  { %v1140_v40 = vadd.f32 %v1136_v11, %v1120_v26  ;;  %v3966_v26 = vmov 14  }
 0x35a   :  { %v1156_v35 = vpop.permute.xlu0 %1155 }
 0x35b   :  { %v1160_v2 = vadd.f32 %v1156_v35, %v1140_v40  ;;  %v3968_v40 = vmov 15  }
 0x35e   :  { %v1042_v49 = vpop.permute.xlu0 %1041 }
 0x35f   :  { %v1047_v23 = vadd.f32 %v1042_v49, %v1027_v0 }
 0x362   :  { %v1062_v52 = vpop.permute.xlu0 %1061 }
 0x363   :  { %v1067_v14 = vadd.f32 %v1062_v52, %v1047_v23 }
 0x366   :  { %v1082_v51 = vpop.permute.xlu0 %1081 }
 0x367   :  { %v1087_v28 = vadd.f32 %v1082_v51, %v1067_v14  ;;  %v3956_v14 = vmov 3  }
 0x369   :  { %v1099_v21 = vadd.f32 %v1097_v61, %v1087_v28  ;;  %v3959_v28 = vmov 9   ;;  %v3961_v61 = vmov 13  }
 0x36a   :  { %v1114_v16 = vpop.permute.xlu0 %1113 }
 0x36b   :  { %v1119_v12 = vadd.f32 %v1114_v16, %v1099_v21  ;;  %v3957_v16 = vmov 5   ;;  %v3964_v21 = vmov 11  }
 0x36e   :  { %v1134_v41 = vpop.permute.xlu0 %1133 }
 0x36f   :  { %v1139_v62 = vadd.f32 %v1134_v41, %v1119_v12  ;;  %v3965_v41 = vmov 21   ;;  %v3969_v12 = vmov 29  }
 0x372   :  { %v1188_v19 = vpop.permute.xlu0 %1187 }
 0x376   :  { %v1208_v1 = vpop.permute.xlu0 %1207 }
 0x37a   :  { %v1228_v53 = vpop.permute.xlu0 %1227 }
 0x37d   :  { %v568_v37 = vpop.xlane.xlu1 %567 }
 0x37e   :  { %v569_v44 = vmax.f32 %v568_v37, 1.0  ;;  %v3962_v37 = vmov 10  }
 0x380   :  { %2793 = vrcp.f32 %v569_v44  ;;  %v3975_v44 = vmov 20  }
 0x381   :  { %v1167_v57 = vpop.permute.xlu1 %1166 }
 0x382   :  { %v1170_v60 = vmul.f32 %v1167_v57, %v3379_v22  ;;  %v3967_v57 = vmov 25  }
 0x384   :  { %v1172_v39 = vadd.f32 %v1170_v60, %v1160_v2  ;;  %v3970_v60 = vmov 18   ;;  %v3971_v2 = vmov 31  }
 0x385   :  { %v1154_v47 = vpop.permute.xlu1 %1153 }
 0x386   :  { %v1159_v20 = vadd.f32 %v1154_v47, %v1139_v62  ;;  %v1192_v54 = vadd.f32 %v1188_v19, %v1172_v39  ;;  %v3972_v62 = vmov 19   ;;  %v3973_v19 = vmov 12  }
 0x387   :  { %v3974_v47 = vmov 22   ;;  %v3976_v39 = vmov 23  }
 0x388   :  { %v1171_v4 = vadd.f32 %v1169_v46, %v1159_v20  ;;  %v1212_v11 = vadd.f32 %v1208_v1, %v1192_v54  ;;  %v3977_v20 = vmov 26   ;;  %v3978_v46 = vmov 27  }
 0x389   :  { %v1186_v42 = vpop.permute.xlu1 %1185  ;;  %v3980_v54 = vmov 30   ;;  %v3982_v1 = vmov 8  }
 0x38a   :  { %v1191_v5 = vadd.f32 %v1186_v42, %v1171_v4  ;;  %v1232_v35 = vadd.f32 %v1228_v53, %v1212_v11  ;;  %v2794_v17 = vpop.eup %2793  ;;  %v3979_v42 = vmov 0   ;;  %v3981_v4 = vmov 4  }
 0x38b   :  { %v3451_v10 = vmul.f32 %v2794_v17, %v3952_v58  ;;  %v3985_v11 = vmov 1   ;;  %v3987_v53 = vmov 28  }
 0x38d   :  { %v1206_v59 = vpop.permute.xlu1 %1205 }
 0x38e   :  { %v1211_v49 = vadd.f32 %v1206_v59, %v1191_v5  ;;  %v3983_v59 = vmov 16   ;;  %v3984_v5 = vmov 24  }
 0x391   :  { %v1226_v55 = vpop.permute.xlu1 %1225 }
 0x392   :  { %v1231_v50 = vadd.f32 %v1226_v55, %v1211_v49  ;;  %v3986_v49 = vmov 2  }
 0x394   :  { %v2597_v52 = vpack.c.bf16 %v1232_v35, %v1231_v50 }
 0x396   :  { %2598 = vmatpush3.bf16.msra.mxu0 %v2597_v52 }
 0x397   :  { %2599 = vmatprep.subr.bf16.mxu0 %v3953_v25 }
 0x399   :  { %2539 = vmatmul.mubr.msk.f32.vlgmr.msra.gmra.mrb[10].mxu0 %vm565_vm7, %v3451_v10 }
 0x39a   :  { %2550 = vmatprep.mubr.msk.f32.mxu0 %vm2796_vm2, %v3954_v36 }
 0x46c   :  { %v1308_v6 = vpop.f32.mrb[10].mxu0 }
 0x46d   :  { %v1309_v51 = vadd.f32 %v2478_v38, %v1308_v6  ;;  %v2540_v45 = vpop.f32.mrb[11].mxu0 }
 0x46f   :  { %v1312_v0 = vmax.f32 %v1309_v51, 0.0 }
 0x471   :  { %2541 = vmatprep.subr.mxu1 %v1312_v0 }
 0x472   :  { %2542 = vmatpush3.msra.mxu1 %v1312_v0 }
 0x473   :  { %2544 = vmatmul.mubr.msk.f32.vlgmr.msra.gmra.mrb[10].mxu1 %vm573_vm3, %v3955_v31  ;;  %2553 = vmatprep.subr.mxu1 %v3954_v36 }
 0x474   :  { %2555 = vmatprep.mubr.msk.f32.mxu1 %vm2796_vm2, %v3954_v36 }
 0x546   :  { %v3466_v23 = vpop.f32.mrb[10].mxu1 }
 0x547   :  { %1428 = vperm.xlu1 %2724, %v3466_v23   ;;  %1408 = vperm.xlu0 %2723, %v3466_v23   ;;  %v3470_v34 = vpop.f32.mrb[11].mxu1 }
 0x54b   :  { %2725 = vset.pattern.permute.xlu1 %v3956_v14  ;;  %2726 = vset.pattern.permute.xlu0 %v3957_v16 }
 0x54c   :  { %1448 = vperm.xlu1 %2725, %v3466_v23   ;;  %1480 = vperm.xlu0 %2726, %v3466_v23  }
 0x550   :  { %2727 = vset.pattern.permute.xlu1 %v3958_v43  ;;  %2729 = vset.pattern.permute.xlu0 %v3959_v28 }
 0x551   :  { %1500 = vperm.xlu1 %2727, %v3466_v23   ;;  %1552 = vperm.xlu0 %2729, %v3466_v23  }
 0x555   :  { %2728 = vset.pattern.permute.xlu1 %v3960_v8  ;;  %2732 = vset.pattern.permute.xlu0 %v3961_v61 }
 0x556   :  { %1520 = vperm.xlu1 %2728, %v3466_v23   ;;  %1624 = vperm.xlu0 %2732, %v3466_v23  }
 0x55a   :  { %2730 = vset.pattern.permute.xlu1 %v3962_v37  ;;  %2735 = vset.pattern.permute.xlu0 %v3963_v33 }
 0x55b   :  { %1572 = vperm.xlu1 %2730, %v3466_v23   ;;  %1696 = vperm.xlu0 %2735, %v3466_v23  }
 0x55f   :  { %2731 = vset.pattern.permute.xlu1 %v3964_v21  ;;  %2738 = vset.pattern.permute.xlu0 %v3965_v41 }
 0x560   :  { %1592 = vperm.xlu1 %2731, %v3466_v23   ;;  %1768 = vperm.xlu0 %2738, %v3466_v23  }
 0x564   :  { %2733 = vset.pattern.permute.xlu1 %v3966_v26  ;;  %2741 = vset.pattern.permute.xlu0 %v3967_v57 }
 0x565   :  { %1644 = vperm.xlu1 %2733, %v3466_v23   ;;  %1840 = vperm.xlu0 %2741, %v3466_v23  }
 0x569   :  { %2734 = vset.pattern.permute.xlu1 %v3968_v40  ;;  %2744 = vset.pattern.permute.xlu0 %v3969_v12 }
 0x56a   :  { %1664 = vperm.xlu1 %2734, %v3466_v23   ;;  %1912 = vperm.xlu0 %2744, %v3466_v23  }
 0x56e   :  { %2736 = vset.pattern.permute.xlu1 %v3970_v60  ;;  %2747 = vset.pattern.permute.xlu0 %v3971_v2 }
 0x56f   :  { %1716 = vperm.xlu1 %2736, %v3466_v23   ;;  %1952 = vperm.xlu0 %2747, %v3466_v23  }
 0x573   :  { %2737 = vset.pattern.permute.xlu1 %v3972_v62  ;;  %2750 = vset.pattern.permute.xlu0 %v3973_v19 }
 0x574   :  { %1736 = vperm.xlu1 %2737, %v3466_v23   ;;  %1612 = vperm.xlu0 %2750, %v3466_v23  }
 0x578   :  { %2739 = vset.pattern.permute.xlu1 %v3974_v47  ;;  %2752 = vset.pattern.permute.xlu0 %v3975_v44 }
 0x579   :  { %1788 = vperm.xlu1 %2739, %v3466_v23   ;;  %1756 = vperm.xlu0 %2752, %v3466_v23  }
 0x57d   :  { %2740 = vset.pattern.permute.xlu1 %v3976_v39  ;;  %2756 = vset.pattern.permute.xlu0 %v3956_v14 }
 0x57e   :  { %1808 = vperm.xlu1 %2740, %v3466_v23   ;;  %1444 = vperm.xlu0 %2756, %v3470_v34  }
 0x582   :  { %2742 = vset.pattern.permute.xlu1 %v3977_v20  ;;  %2759 = vset.pattern.permute.xlu0 %v3960_v8 }
 0x583   :  { %1860 = vperm.xlu1 %2742, %v3466_v23   ;;  %1516 = vperm.xlu0 %2759, %v3470_v34  }
 0x587   :  { %2743 = vset.pattern.permute.xlu1 %v3978_v46  ;;  %2762 = vset.pattern.permute.xlu0 %v3964_v21 }
 0x588   :  { %1880 = vperm.xlu1 %2743, %v3466_v23   ;;  %1588 = vperm.xlu0 %2762, %v3470_v34  }
 0x58c   :  { %2745 = vset.pattern.permute.xlu1 %v3979_v42  ;;  %2765 = vset.pattern.permute.xlu0 %v3968_v40 }
 0x58d   :  { %1396 = vperm.xlu1 %2745, %v3466_v23   ;;  %1660 = vperm.xlu0 %2765, %v3470_v34  }
 0x591   :  { %2746 = vset.pattern.permute.xlu1 %v3980_v54  ;;  %2768 = vset.pattern.permute.xlu0 %v3972_v62 }
 0x592   :  { %1932 = vperm.xlu1 %2746, %v3466_v23   ;;  %1732 = vperm.xlu0 %2768, %v3470_v34  }
 0x596   :  { %2748 = vset.pattern.permute.xlu1 %v3981_v4  ;;  %2771 = vset.pattern.permute.xlu0 %v3976_v39 }
 0x597   :  { %1468 = vperm.xlu1 %2748, %v3466_v23   ;;  %1804 = vperm.xlu0 %2771, %v3470_v34  }
 0x59b   :  { %2749 = vset.pattern.permute.xlu1 %v3982_v1  ;;  %2774 = vset.pattern.permute.xlu0 %v3978_v46 }
 0x59c   :  { %1540 = vperm.xlu1 %2749, %v3466_v23   ;;  %1876 = vperm.xlu0 %2774, %v3470_v34  }
 0x5a0   :  { %2751 = vset.pattern.permute.xlu1 %v3983_v59  ;;  %2777 = vset.pattern.permute.xlu0 %v3980_v54 }
 0x5a1   :  { %1684 = vperm.xlu1 %2751, %v3466_v23   ;;  %1928 = vperm.xlu0 %2777, %v3470_v34  }
 0x5a5   :  { %2753 = vset.pattern.permute.xlu1 %v3984_v5  ;;  %2780 = vset.pattern.permute.xlu0 %v3982_v1 }
 0x5a6   :  { %1828 = vperm.xlu1 %2753, %v3466_v23   ;;  %1536 = vperm.xlu0 %2780, %v3470_v34  }
 0x5aa   :  { %2754 = vset.pattern.permute.xlu1 %v3985_v11  ;;  %2782 = vset.pattern.permute.xlu0 %v3983_v59 }
 0x5ab   :  { %1680 = vperm.xlu0 %2782, %v3470_v34   ;;  %1404 = vperm.xlu1 %2754, %v3470_v34  }
 0x5af   :  { %2784 = vset.pattern.permute.xlu0 %v3984_v5  ;;  %2755 = vset.pattern.permute.xlu1 %v3986_v49 }
 0x5b0   :  { %1824 = vperm.xlu0 %2784, %v3470_v34   ;;  %1424 = vperm.xlu1 %2755, %v3470_v34  }
 0x5b4   :  { %2757 = vset.pattern.permute.xlu1 %v3957_v16  ;;  %2786 = vset.pattern.permute.xlu0 %v3987_v53 }
 0x5b5   :  { %1476 = vperm.xlu1 %2757, %v3470_v34  }
 0x5b9   :  { %2758 = vset.pattern.permute.xlu1 %v3958_v43 }
 0x5ba   :  { %1496 = vperm.xlu1 %2758, %v3470_v34  }
 0x5be   :  { %2760 = vset.pattern.permute.xlu1 %v3959_v28 }
 0x5bf   :  { %1548 = vperm.xlu1 %2760, %v3470_v34  }
 0x5c3   :  { %2761 = vset.pattern.permute.xlu1 %v3962_v37 }
 0x5c4   :  { %1568 = vperm.xlu1 %2761, %v3470_v34  }
 0x5c6   :  { %v3565_v55 = vpop.permute.xlu1 %1428  ;;  %v1409_v35 = vpop.permute.xlu0 %1408 }
 0x5c7   :  { %v1432_v62 = vmul.f32 %v3565_v55, %v3151_v29 }
 0x5c8   :  { %2763 = vset.pattern.permute.xlu1 %v3961_v61 }
 0x5c9   :  { %1620 = vperm.xlu1 %2763, %v3470_v34  }
 0x5cb   :  { %v3569_v50 = vpop.permute.xlu1 %1448  ;;  %v1481_v17 = vpop.permute.xlu0 %1480 }
 0x5cc   :  { %v1484_v52 = vmul.f32 %v1481_v17, %v3243_v9  ;;  %v3988_v17 = vld [vmem:[#allocation4_spill] sm:$0xff] }
 0x5cd   :  { %2764 = vset.pattern.permute.xlu1 %v3966_v26 }
 0x5ce   :  { %1489 = vrot.lane.b32.xlu0 %v1484_v52, %s2828_s7  ;;  %1640 = vperm.xlu1 %2764, %v3470_v34  }
 0x5d0   :  { %v1501_v58 = vpop.permute.xlu1 %1500  ;;  %v1553_v6 = vpop.permute.xlu0 %1552 }
 0x5d1   :  { %v1504_v38 = vmul.f32 %v1501_v58, %v3243_v9 }
 0x5d2   :  { %2766 = vset.pattern.permute.xlu1 %v3963_v33 }
 0x5d3   :  { %1509 = vrot.lane.b32.xlu0 %v1504_v38, %s2829_s9  ;;  %1692 = vperm.xlu1 %2766, %v3470_v34  }
 0x5d5   :  { %v1521_v51 = vpop.permute.xlu1 %1520  ;;  %v1625_v0 = vpop.permute.xlu0 %1624 }
 0x5d6   :  { %v1524_v45 = vmul.f32 %v1521_v51, %v3243_v9  ;;  %v1628_v31 = vmul.f32 %v1625_v0, %v3262_v13 }
 0x5d7   :  { %2767 = vset.pattern.permute.xlu1 %v3970_v60 }
 0x5d8   :  { %1529 = vrot.lane.b32.xlu0 %v1524_v45, %s2830_s27  ;;  %1712 = vperm.xlu1 %2767, %v3470_v34  }
 0x5da   :  { %v1573_v14 = vpop.permute.xlu1 %1572 }
 0x5dc   :  { %1633 = vrot.lane.b32.xlu0 %v1628_v31, %s2828_s7  ;;  %2769 = vset.pattern.permute.xlu1 %v3965_v41 }
 0x5dd   :  { %1764 = vperm.xlu1 %2769, %v3470_v34  }
 0x5df   :  { %v1593_v16 = vpop.permute.xlu1 %1592 }
 0x5e0   :  { %v1596_v59 = vmul.f32 %v1593_v16, %v3177_v32 }
 0x5e1   :  { %2770 = vset.pattern.permute.xlu1 %v3974_v47 }
 0x5e2   :  { %1784 = vperm.xlu1 %2770, %v3470_v34  }
 0x5e4   :  { %v1645_v43 = vpop.permute.xlu1 %1644 }
 0x5e5   :  { %v1648_v28 = vmul.f32 %v1645_v43, %v3262_v13 }
 0x5e6   :  { %2772 = vset.pattern.permute.xlu1 %v3967_v57  ;;  %v1697_v57 = vpop.permute.xlu0 %1696 }
 0x5e7   :  { %1653 = vrot.lane.b32.xlu0 %v1648_v28, %s2829_s9  ;;  %1836 = vperm.xlu1 %2772, %v3470_v34   ;;  %v1700_v11 = vmul.f32 %v1697_v57, %v3202_v27 }
 0x5e9   :  { %v1665_v8 = vpop.permute.xlu1 %1664 }
 0x5ea   :  { %v1668_v61 = vmul.f32 %v1665_v8, %v3262_v13 }
 0x5eb   :  { %2773 = vset.pattern.permute.xlu1 %v3977_v20  ;;  %v1556_v20 = vmul.f32 %v1553_v6, %v3177_v32 }
 0x5ec   :  { %1673 = vrot.lane.b32.xlu0 %v1668_v61, %s2830_s27  ;;  %1856 = vperm.xlu1 %2773, %v3470_v34  }
 0x5ee   :  { %v1717_v37 = vpop.permute.xlu1 %1716 }
 0x5ef   :  { %v1720_v55 = vmul.f32 %v1717_v37, %v3202_v27 }
 0x5f0   :  { %2775 = vset.pattern.permute.xlu1 %v3969_v12  ;;  %v1412_v12 = vmul.f32 %v1409_v35, %v3151_v29 }
 0x5f1   :  { %1908 = vperm.xlu1 %2775, %v3470_v34  }
 0x5f3   :  { %v1737_v33 = vpop.permute.xlu1 %1736 }
 0x5f4   :  { %v1740_v58 = vmul.f32 %v1737_v33, %v3202_v27 }
 0x5f5   :  { %2776 = vset.pattern.permute.xlu1 %v3979_v42 }
 0x5f6   :  { %1391 = vperm.xlu1 %2776, %v3470_v34  }
 0x5f8   :  { %v1789_v21 = vpop.permute.xlu1 %1788 }
 0x5f9   :  { %v1792_v8 = vmul.f32 %v1789_v21, %v3313_v30 }
 0x5fa   :  { %2778 = vset.pattern.permute.xlu1 %v3971_v2  ;;  %v1769_v2 = vpop.permute.xlu0 %1768 }
 0x5fb   :  { %1948 = vperm.xlu1 %2778, %v3470_v34  }
 0x5fd   :  { %v3603_v41 = vpop.permute.xlu1 %1808 }
 0x5fe   :  { %v3625_v47 = vpop.permute.xlu0 %1840 }
 0x5ff   :  { %2779 = vset.pattern.permute.xlu1 %v3981_v4  ;;  %v1576_v4 = vmul.f32 %v1573_v14, %v3177_v32  ;;  %v1772_v14 = vmul.f32 %v1769_v2, %v3313_v30 }
 0x600   :  { %1464 = vperm.xlu1 %2779, %v3470_v34  }
 0x602   :  { %v3607_v26 = vpop.permute.xlu1 %1860  ;;  %v3633_v46 = vpop.permute.xlu0 %1912 }
 0x604   :  { %2781 = vset.pattern.permute.xlu1 %v3973_v19 }
 0x605   :  { %1608 = vperm.xlu1 %2781, %v3470_v34  }
 0x606   :  { %v3640_v1 = vpop.permute.xlu0 %1952 }
 0x607   :  { %v3611_v40 = vpop.permute.xlu1 %1880 }
 0x609   :  { %2783 = vset.pattern.permute.xlu1 %v3975_v44  ;;  %v1452_v44 = vmul.f32 %v3569_v50, %v3151_v29 }
 0x60a   :  { %1752 = vperm.xlu1 %2783, %v3470_v34   ;;  %v3647_v49 = vpop.permute.xlu0 %1612 }
 0x60c   :  { %v3616_v60 = vpop.permute.xlu1 %1396 }
 0x60e   :  { %1417 = vrot.lane.b32.xlu1 %v1412_v12, %s2828_s7  ;;  %v3654_v50 = vpop.permute.xlu0 %1756 }
 0x60f   :  { %2785 = vset.pattern.permute.xlu1 %v3987_v53 }
 0x611   :  { %v3622_v19 = vpop.permute.xlu1 %1932 }
 0x612   :  { %1437 = vrot.lane.b32.xlu1 %v1432_v62, %s2829_s9  ;;  %v1445_v51 = vpop.permute.xlu0 %1444 }
 0x613   :  { %v1451_v45 = vmul.f32 %v1445_v51, %v3988_v17 }
 0x616   :  { %v3629_v39 = vpop.permute.xlu1 %1468  ;;  %1457 = vrot.lane.b32.xlu1 %v1452_v44, %s2830_s27  ;;  %v1517_v28 = vpop.permute.xlu0 %1516 }
 0x617   :  { %v1523_v61 = vmul.f32 %v1517_v28, %v3231_v24 }
 0x61a   :  { %1561 = vrot.lane.b32.xlu1 %v1556_v20, %s2828_s7  ;;  %v1589_v2 = vpop.permute.xlu0 %1588  ;;  %v1812_v20 = vmul.f32 %v3603_v41, %v3313_v30 }
 0x61b   :  { %v3636_v54 = vpop.permute.xlu1 %1540  ;;  %v1595_v21 = vmul.f32 %v1589_v2, %v3297_v63 }
 0x61e   :  { %1581 = vrot.lane.b32.xlu1 %v1576_v4, %s2829_s9 }
 0x620   :  { %v3643_v5 = vpop.permute.xlu1 %1684 }
 0x622   :  { %1601 = vrot.lane.b32.xlu1 %v1596_v59, %s2830_s27 }
 0x625   :  { %v3649_v53 = vpop.permute.xlu1 %1828 }
 0x626   :  { %1705 = vrot.lane.b32.xlu1 %v1700_v11, %s2828_s7  ;;  %v1661_v11 = vpop.permute.xlu0 %1660 }
 0x62a   :  { %1725 = vrot.lane.b32.xlu1 %v1720_v55, %s2829_s9  ;;  %v1405_v35 = vpop.permute.xlu1 %1404  ;;  %v1733_v41 = vpop.permute.xlu0 %1732 }
 0x62b   :  { %v1411_v52 = vmul.f32 %v1405_v35, %v3988_v17 }
 0x62d   :  { %1415 = vrot.lane.b32.xlu0 %v1411_v52, %s2828_s7 }
 0x62e   :  { %1745 = vrot.lane.b32.xlu1 %v1740_v58, %s2830_s27 }
 0x62f   :  { %v1425_v38 = vpop.permute.xlu1 %1424 }
 0x630   :  { %v1431_v6 = vmul.f32 %v1425_v38, %v3988_v17  ;;  %v1844_v38 = vmul.f32 %v3625_v47, %v3337_v7 }
 0x632   :  { %1435 = vrot.lane.b32.xlu0 %v1431_v6, %s2829_s9  ;;  %v1739_v6 = vmul.f32 %v1733_v41, %v3317_v48  ;;  %v2044_v41 = vld [vmem:[%s3863_s2] sm:$0xff] }
 0x634   :  { %v1477_v0 = vpop.permute.xlu1 %1476 }
 0x635   :  { %v1483_v31 = vmul.f32 %v1477_v0, %v3231_v24  ;;  %v1864_v0 = vmul.f32 %v3607_v26, %v3337_v7 }
 0x636   :  { %1455 = vrot.lane.b32.xlu0 %v1451_v45, %s2830_s27  ;;  %v1805_v45 = vpop.permute.xlu0 %1804 }
 0x637   :  { %1487 = vrot.lane.b32.xlu1 %v1483_v31, %s2828_s7 }
 0x639   :  { %v1497_v16 = vpop.permute.xlu1 %1496 }
 0x63a   :  { %v1503_v43 = vmul.f32 %v1497_v16, %v3231_v24  ;;  %1777 = vrot.lane.b32.xlu0 %v1772_v14, %s2828_s7  ;;  %v1884_v14 = vmul.f32 %v3611_v40, %v3337_v7  ;;  %v1877_v47 = vpop.permute.xlu0 %1876 }
 0x63c   :  { %1507 = vrot.lane.b32.xlu1 %v1503_v43, %s2829_s9 }
 0x63e   :  { %1797 = vrot.lane.b32.xlu0 %v1792_v8, %s2829_s9  ;;  %v1549_v37 = vpop.permute.xlu1 %1548  ;;  %v1929_v26 = vpop.permute.xlu0 %1928 }
 0x63f   :  { %v1555_v33 = vmul.f32 %v1549_v37, %v3297_v63  ;;  %v1883_v37 = vmul.f32 %v1877_v47, %v3363_v56  ;;  %v1472_v47 = vmul.f32 %v3629_v39, %v3243_v9 }
 0x640   :  { %1527 = vrot.lane.b32.xlu1 %v1523_v61, %s2830_s27 }
 0x642   :  { %v3715_v40 = vpop.permute.xlu0 %1536 }
 0x643   :  { %v1569_v57 = vpop.permute.xlu1 %1568 }
 0x644   :  { %v1575_v12 = vmul.f32 %v1569_v57, %v3297_v63  ;;  %1559 = vrot.lane.b32.xlu1 %v1555_v33, %s2828_s7 }
 0x646   :  { %1579 = vrot.lane.b32.xlu0 %v1575_v12, %s2829_s9  ;;  %v3723_v12 = vpop.permute.xlu0 %1680 }
 0x648   :  { %1896 = vperm.xlu1 %2785, %v3470_v34   ;;  %v1621_v62 = vpop.permute.xlu1 %1620  ;;  %v1667_v34 = vmul.f32 %v1661_v11, %v3292_v18 }
 0x649   :  { %v1627_v44 = vmul.f32 %v1621_v62, %v3292_v18  ;;  %v1935_v62 = vmul.f32 %v1929_v26, %v3951_v15 }
 0x64a   :  { %1599 = vrot.lane.b32.xlu0 %v1595_v21, %s2830_s27  ;;  %v1916_v21 = vmul.f32 %v3633_v46, %v3379_v22  ;;  %v1956_v46 = vmul.f32 %v3640_v1, %v3379_v22 }
 0x64c   :  { %1631 = vrot.lane.b32.xlu1 %v1627_v44, %s2828_s7  ;;  %v1936_v44 = vmul.f32 %v3622_v19, %v3379_v22 }
 0x64d   :  { %v1641_v4 = vpop.permute.xlu1 %1640  ;;  %2788 = vset.pattern.permute.xlu1 %v3979_v42 }
 0x64e   :  { %v1647_v59 = vmul.f32 %v1641_v4, %v3292_v18  ;;  %1817 = vrot.lane.b32.xlu0 %v1812_v20, %s2830_s27  ;;  %v3733_v4 = vpop.permute.xlu0 %1824 }
 0x650   :  { %1651 = vrot.lane.b32.xlu1 %v1647_v59, %s2829_s9 }
 0x652   :  { %v1693_v55 = vpop.permute.xlu1 %1692  ;;  %v1490_v11 = vpop.permute.xlu0 %1489 }
 0x653   :  { %v1699_v35 = vmul.f32 %v1693_v55, %v3317_v48 }
 0x654   :  { %1671 = vrot.lane.b32.xlu1 %v1667_v34, %s2830_s27 }
 0x656   :  { %v1510_v19 = vpop.permute.xlu0 %1509 }
 0x657   :  { %v1713_v52 = vpop.permute.xlu1 %1712 }
 0x658   :  { %v1719_v58 = vmul.f32 %v1713_v52, %v3317_v48  ;;  %1703 = vrot.lane.b32.xlu1 %v1699_v35, %s2828_s7  ;;  %v2050_v35 = vld [vmem:[%s3862_s3] sm:$0xff] }
 0x65a   :  { %1723 = vrot.lane.b32.xlu0 %v1719_v58, %s2829_s9  ;;  %v1530_v1 = vpop.permute.xlu0 %1529 }
 0x65c   :  { %1849 = vrot.lane.b32.xlu1 %v1844_v38, %s2828_s7  ;;  %v1765_v51 = vpop.permute.xlu1 %1764  ;;  %v1400_v38 = vmul.f32 %v3616_v60, %v3151_v29 }
 0x65d   :  { %v1771_v16 = vmul.f32 %v1765_v51, %v3350_v3 }
 0x65e   :  { %1743 = vrot.lane.b32.xlu0 %v1739_v6, %s2830_s27  ;;  %v1634_v6 = vpop.permute.xlu0 %1633 }
 0x660   :  { %1869 = vrot.lane.b32.xlu1 %v1864_v0, %s2829_s9 }
 0x661   :  { %v1785_v31 = vpop.permute.xlu1 %1784 }
 0x662   :  { %1900 = vperm.xlu0 %2786, %v3466_v23   ;;  %v1791_v28 = vmul.f32 %v1785_v31, %v3350_v3  ;;  %v1811_v23 = vmul.f32 %v1805_v45, %v3350_v3  ;;  %v1654_v31 = vpop.permute.xlu0 %1653 }
 0x664   :  { %1889 = vrot.lane.b32.xlu1 %v1884_v14, %s2830_s27 }
 0x666   :  { %v1837_v43 = vpop.permute.xlu1 %1836  ;;  %2787 = vset.pattern.permute.xlu0 %v3979_v42 }
 0x667   :  { %v1843_v33 = vmul.f32 %v1837_v43, %v3363_v56 }
 0x668   :  { %1775 = vrot.lane.b32.xlu1 %v1771_v16, %s2828_s7 }
 0x66b   :  { %v1857_v8 = vpop.permute.xlu1 %1856 }
 0x66c   :  { %v1863_v61 = vmul.f32 %v1857_v8, %v3363_v56  ;;  %1795 = vrot.lane.b32.xlu1 %v1791_v28, %s2829_s9  ;;  %v1674_v8 = vpop.permute.xlu0 %1673 }
 0x66e   :  { %1867 = vrot.lane.b32.xlu0 %v1863_v61, %s2829_s9 }
 0x670   :  { %1815 = vrot.lane.b32.xlu1 %v1811_v23, %s2830_s27  ;;  %v1909_v42 = vpop.permute.xlu1 %1908 }
 0x671   :  { %v1915_v57 = vmul.f32 %v1909_v42, %v3951_v15 }
 0x672   :  { %1887 = vrot.lane.b32.xlu0 %v1883_v37, %s2830_s27  ;;  %v1544_v37 = vmul.f32 %v3636_v54, %v3177_v32 }
 0x674   :  { %1847 = vrot.lane.b32.xlu1 %v1843_v33, %s2828_s7 }
 0x675   :  { %v1392_v2 = vpop.permute.xlu1 %1391 }
 0x676   :  { %1919 = vrot.lane.b32.xlu0 %v1915_v57, %s2828_s7 }
 0x678   :  { %1921 = vrot.lane.b32.xlu1 %v1916_v21, %s2828_s7  ;;  %v1399_v21 = vmul.f32 %v1392_v2, %v3988_v17  ;;  %v1688_v17 = vmul.f32 %v3643_v5, %v3202_v27 }
 0x67a   :  { %1939 = vrot.lane.b32.xlu0 %v1935_v62, %s2829_s9  ;;  %v1949_v20 = vpop.permute.xlu1 %1948 }
 0x67b   :  { %v1955_v59 = vmul.f32 %v1949_v20, %v3951_v15  ;;  %v1616_v20 = vmul.f32 %v3647_v49, %v3262_v13 }
 0x67c   :  { %1941 = vrot.lane.b32.xlu1 %v1936_v44, %s2829_s9 }
 0x67e   :  { %1959 = vrot.lane.b32.xlu0 %v1955_v59, %s2830_s27 }
 0x67f   :  { %v1465_v34 = vpop.permute.xlu1 %1464 }
 0x680   :  { %1961 = vrot.lane.b32.xlu1 %v1956_v46, %s2830_s27  ;;  %v1471_v32 = vmul.f32 %v1465_v34, %v3231_v24 }
 0x682   :  { %2046 = vperm.xlu0 %2787, %v2044_v41  }
 0x684   :  { %v3741_v55 = vpop.permute.xlu1 %1608  ;;  %2052 = vperm.xlu1 %2788, %v2050_v35  }
 0x689   :  { %v3749_v52 = vpop.permute.xlu1 %1752 }
 0x68d   :  { %v1418_v58 = vpop.permute.xlu1 %1417 }
 0x68e   :  { %v1422_v45 = vadd.f32 %v1418_v58, %v1400_v38 }
 0x691   :  { %v1438_v51 = vpop.permute.xlu1 %1437 }
 0x692   :  { %v1442_v0 = vadd.f32 %v1438_v51, %v1422_v45 }
 0x695   :  { %v1458_v14 = vpop.permute.xlu1 %1457 }
 0x696   :  { %v1462_v16 = vadd.f32 %v1458_v14, %v1442_v0 }
 0x698   :  { %v1474_v43 = vadd.f32 %v1472_v47, %v1462_v16  ;;  %v1760_v47 = vmul.f32 %v3654_v50, %v3313_v30 }
 0x699   :  { %v1562_v26 = vpop.permute.xlu1 %1561 }
 0x69a   :  { %v1494_v28 = vadd.f32 %v1490_v11, %v1474_v43 }
 0x69c   :  { %v1514_v61 = vadd.f32 %v1510_v19, %v1494_v28 }
 0x69d   :  { %v1582_v23 = vpop.permute.xlu1 %1581 }
 0x69e   :  { %v1534_v29 = vadd.f32 %v1530_v1, %v1514_v61 }
 0x69f   :  { %v1416_v60 = vpop.permute.xlu0 %1415 }
 0x6a0   :  { %v1546_v42 = vadd.f32 %v1544_v37, %v1534_v29  ;;  %v1421_v9 = vadd.f32 %v1416_v60, %v1399_v21  ;;  %v1615_v29 = vmul.f32 %v3741_v55, %v3292_v18  ;;  %v1759_v55 = vmul.f32 %v3749_v52, %v3350_v3 }
 0x6a1   :  { %v1602_v33 = vpop.permute.xlu1 %1601  ;;  %v1831_v3 = vmul.f32 %v3733_v4, %v3363_v56 }
 0x6a2   :  { %v1566_v57 = vadd.f32 %v1562_v26, %v1546_v42  ;;  %v1543_v26 = vmul.f32 %v3715_v40, %v3297_v63  ;;  %v1687_v63 = vmul.f32 %v3723_v12, %v3317_v48 }
 0x6a4   :  { %v1586_v62 = vadd.f32 %v1582_v23, %v1566_v57  ;;  %v1436_v44 = vpop.permute.xlu0 %1435 }
 0x6a5   :  { %v1706_v39 = vpop.permute.xlu1 %1705  ;;  %v1441_v46 = vadd.f32 %v1436_v44, %v1421_v9 }
 0x6a6   :  { %v1606_v59 = vadd.f32 %v1602_v33, %v1586_v62 }
 0x6a8   :  { %v1618_v11 = vadd.f32 %v1616_v20, %v1606_v59  ;;  %v1456_v19 = vpop.permute.xlu0 %1455 }
 0x6a9   :  { %v1461_v54 = vadd.f32 %v1456_v19, %v1441_v46  ;;  %v1726_v35 = vpop.permute.xlu1 %1725 }
 0x6aa   :  { %v1638_v41 = vadd.f32 %v1634_v6, %v1618_v11 }
 0x6ab   :  { %v1473_v1 = vadd.f32 %v1471_v32, %v1461_v54 }
 0x6ac   :  { %v1658_v58 = vadd.f32 %v1654_v31, %v1638_v41  ;;  %v1778_v45 = vpop.permute.xlu0 %1777 }
 0x6ad   :  { %v1746_v38 = vpop.permute.xlu1 %1745 }
 0x6ae   :  { %v1678_v2 = vadd.f32 %v1674_v8, %v1658_v58 }
 0x6b0   :  { %v1690_v51 = vadd.f32 %v1688_v17, %v1678_v2  ;;  %v1798_v16 = vpop.permute.xlu0 %1797 }
 0x6b1   :  { %v1488_v0 = vpop.permute.xlu1 %1487 }
 0x6b2   :  { %v1710_v13 = vadd.f32 %v1706_v39, %v1690_v51  ;;  %v1493_v34 = vadd.f32 %v1488_v0, %v1473_v1  ;;  %v1832_v0 = vmul.f32 %v3649_v53, %v3337_v7 }
 0x6b4   :  { %v1730_v49 = vadd.f32 %v1726_v35, %v1710_v13 }
 0x6b5   :  { %v1508_v14 = vpop.permute.xlu1 %1507 }
 0x6b6   :  { %v1750_v24 = vadd.f32 %v1746_v38, %v1730_v49  ;;  %v1513_v43 = vadd.f32 %v1508_v14, %v1493_v34 }
 0x6b8   :  { %v1762_v6 = vadd.f32 %v1760_v47, %v1750_v24  ;;  %v1580_v5 = vpop.permute.xlu0 %1579 }
 0x6b9   :  { %v1528_v31 = vpop.permute.xlu1 %1527 }
 0x6ba   :  { %v1533_v27 = vadd.f32 %v1528_v31, %v1513_v43  ;;  %v1782_v1 = vadd.f32 %v1778_v45, %v1762_v6 }
 0x6bc   :  { %v1545_v28 = vadd.f32 %v1543_v26, %v1533_v27  ;;  %v1600_v37 = vpop.permute.xlu0 %1599  ;;  %v1802_v48 = vadd.f32 %v1798_v16, %v1782_v1 }
 0x6bd   :  { %v1560_v8 = vpop.permute.xlu1 %1559 }
 0x6be   :  { %v1565_v61 = vadd.f32 %v1560_v8, %v1545_v28 }
 0x6c0   :  { %v1585_v23 = vadd.f32 %v1580_v5, %v1565_v61  ;;  %v1818_v21 = vpop.permute.xlu0 %1817 }
 0x6c1   :  { %v1822_v17 = vadd.f32 %v1818_v21, %v1802_v48  ;;  %v3989_v21 = vld [vmem:[#allocation2_spill] sm:$0xff] }
 0x6c2   :  { %v1605_v30 = vadd.f32 %v1600_v37, %v1585_v23  ;;  %v2366_v48 = vld [vmem:[%s3866_s14] sm:$0xff] }
 0x6c3   :  { %v1834_v52 = vadd.f32 %v1832_v0, %v1822_v17 }
 0x6c4   :  { %v1617_v50 = vadd.f32 %v1615_v29, %v1605_v30 }
 0x6c7   :  { %v1897_v60 = vpop.permute.xlu1 %1896 }
 0x6c8   :  { %v1903_v27 = vmul.f32 %v1897_v60, %v3951_v15  ;;  %v2482_v60 = vld [vmem:[%s3864_s11] ss:$0 sm:$0xff] }
 0x6cb   :  { %v1632_v42 = vpop.permute.xlu1 %1631 }
 0x6cc   :  { %v1637_v57 = vadd.f32 %v1632_v42, %v1617_v50  ;;  %v1724_v9 = vpop.permute.xlu0 %1723 }
 0x6cf   :  { %v1652_v33 = vpop.permute.xlu1 %1651 }
 0x6d0   :  { %v1657_v62 = vadd.f32 %v1652_v33, %v1637_v57  ;;  %v1744_v11 = vpop.permute.xlu0 %1743 }
 0x6d3   :  { %v1672_v44 = vpop.permute.xlu1 %1671 }
 0x6d4   :  { %v1677_v40 = vadd.f32 %v1672_v44, %v1657_v62  ;;  %v2206_v62 = vld [vmem:[%s3865_s12 + $0x20] sm:$0xff] }
 0x6d6   :  { %v1689_v39 = vadd.f32 %v1687_v63, %v1677_v40  ;;  %v2207_v63 = vld [vmem:[%s3865_s12 + $0x28] sm:$0xff]  ;;  %v2202_v40 = vld [vmem:[%s3865_s12] sm:$0xff] }
 0x6d7   :  { %v1704_v20 = vpop.permute.xlu1 %1703 }
 0x6d8   :  { %v1709_v59 = vadd.f32 %v1704_v20, %v1689_v39 }
 0x6da   :  { %v1729_v46 = vadd.f32 %v1724_v9, %v1709_v59  ;;  %v2203_v9 = vld [vmem:[%s3865_s12 + $0x8] sm:$0xff] }
 0x6db   :  { %v1850_v18 = vpop.permute.xlu1 %1849 }
 0x6dc   :  { %v1749_v19 = vadd.f32 %v1744_v11, %v1729_v46  ;;  %v1854_v47 = vadd.f32 %v1850_v18, %v1834_v52  ;;  %v2603_v46 = vpack.c.bf16 %v2207_v63, %v2206_v62  ;;  %v2609_v11 = vpack.c.bf16 %v2203_v9, %v2202_v40  ;;  %v2208_v18 = vld [vmem:[%s3865_s12 + $0x30] sm:$0xff] }
 0x6de   :  { %v1761_v32 = vadd.f32 %v1759_v55, %v1749_v19  ;;  %v2209_v55 = vld [vmem:[%s3865_s12 + $0x38] sm:$0xff]  ;;  %v2204_v19 = vld [vmem:[%s3865_s12 + $0x10] sm:$0xff] }
 0x6df   :  { %v1870_v54 = vpop.permute.xlu1 %1869 }
 0x6e0   :  { %v1874_v6 = vadd.f32 %v1870_v54, %v1854_v47  ;;  %v2606_v54 = vpack.c.bf16 %v2209_v55, %v2208_v18 }
 0x6e1   :  { %v1901_v35 = vpop.permute.xlu0 %1900 }
 0x6e2   :  { %v1904_v7 = vmul.f32 %v1901_v35, %v3379_v22 }
 0x6e3   :  { %v1890_v41 = vpop.permute.xlu1 %1889 }
 0x6e4   :  { %v1894_v43 = vadd.f32 %v1890_v41, %v1874_v6 }
 0x6e5   :  { %v1868_v58 = vpop.permute.xlu0 %1867 }
 0x6e6   :  { %v1906_v8 = vadd.f32 %v1904_v7, %v1894_v43 }
 0x6e7   :  { %v1776_v38 = vpop.permute.xlu1 %1775 }
 0x6e8   :  { %v1781_v2 = vadd.f32 %v1776_v38, %v1761_v32  ;;  %v2205_v32 = vld [vmem:[%s3865_s12 + $0x18] sm:$0xff] }
 0x6e9   :  { %v1888_v51 = vpop.permute.xlu0 %1887  ;;  %v2612_v35 = vpack.c.bf16 %v2205_v32, %v2204_v19 }
 0x6eb   :  { %v1796_v12 = vpop.permute.xlu1 %1795 }
 0x6ec   :  { %v1801_v13 = vadd.f32 %v1796_v12, %v1781_v2  ;;  %v2367_v12 = vld [vmem:[%s3866_s14 + $0x8] sm:$0xff]  ;;  %v2368_v2 = vld [vmem:[%s3866_s14 + $0x10] sm:$0xff] }
 0x6ed   :  { %v1920_v45 = vpop.permute.xlu0 %1919  ;;  %v2615_v17 = vpack.c.bf16 %v2367_v12, %v2366_v48 }
 0x6ef   :  { %v1816_v49 = vpop.permute.xlu1 %1815 }
 0x6f0   :  { %v1821_v14 = vadd.f32 %v1816_v49, %v1801_v13  ;;  %v2488_v49 = vld [vmem:[%s3867_s13] ss:$0 sm:$0xff] }
 0x6f1   :  { %v1940_v5 = vpop.permute.xlu0 %1939 }
 0x6f2   :  { %v1833_v24 = vadd.f32 %v1831_v3, %v1821_v14 }
 0x6f3   :  { %v1848_v34 = vpop.permute.xlu1 %1847 }
 0x6f4   :  { %v1853_v16 = vadd.f32 %v1848_v34, %v1833_v24  ;;  %v2489_v24 = vld [vmem:[%s3868_s15] ss:$0 sm:$0xff] }
 0x6f5   :  { %v1960_v29 = vpop.permute.xlu0 %1959 }
 0x6f6   :  { %v1873_v31 = vadd.f32 %v1868_v58, %v1853_v16 }
 0x6f7   :  { %v1922_v26 = vpop.permute.xlu1 %1921 }
 0x6f8   :  { %v1893_v53 = vadd.f32 %v1888_v51, %v1873_v31  ;;  %v1926_v61 = vadd.f32 %v1922_v26, %v1906_v8 }
 0x6fa   :  { %v1905_v28 = vadd.f32 %v1903_v27, %v1893_v53 }
 0x6fb   :  { %v1942_v56 = vpop.permute.xlu1 %1941 }
 0x6fc   :  { %v1925_v4 = vadd.f32 %v1920_v45, %v1905_v28  ;;  %v1946_v37 = vadd.f32 %v1942_v56, %v1926_v61 }
 0x6fe   :  { %v1945_v23 = vadd.f32 %v1940_v5, %v1925_v4 }
 0x6ff   :  { %v1962_v30 = vpop.permute.xlu1 %1961 }
 0x700   :  { %v1965_v50 = vadd.f32 %v1960_v29, %v1945_v23  ;;  %v1966_v42 = vadd.f32 %v1962_v30, %v1946_v37 }
 0x701   :  { %v2047_v22 = vpop.permute.xlu0 %2046 }
 0x702   :  { %v2600_v33 = vpack.c.bf16 %v1966_v42, %v1965_v50  ;;  %vm2048_vm8 = vcmp.eq.s32.totalorder %v3989_v21, %v2047_v22 }
 0x703   :  { %v2053_v15 = vpop.permute.xlu1 %2052  ;;  %v2049_v20 = vsel %vm2048_vm8, 1.0, %v3954_v36 }
 0x704   :  { %2601 = vmatpush3.bf16.msra.mxu0 %v2600_v33  ;;  %vm2054_vm9 = vcmp.eq.s32.totalorder %v3989_v21, %v2053_v15 }
 0x705   :  { %2558 = vmatprep.subr.mxu0 %v3954_v36  ;;  %v2055_v59 = vsel %vm2054_vm9, 1.0, %v3954_v36 }
 0x707   :  { %2551 = vmatmul.mubr.msk.f32.vlgmr.msra.gmra.mrb[12].mxu0 %vm565_vm7, %v3451_v10 }
 0x708   :  { %2560 = vmatprep.mubr.msk.f32.mxu0 %vm2796_vm2, %v3954_v36 }
 0x7da   :  { %v2039_v57 = vpop.f32.mrb[12].mxu0 }
 0x7db   :  { %v2040_v44 = vadd.f32 %v2482_v60, %v2039_v57  ;;  %v2552_v10 = vpop.f32.mrb[13].mxu0 }
 0x7dd   :  { %v2043_v39 = vmax.f32 %v2040_v44, 0.0 }
 0x7df   :  { %2554 = vmatpush3.msra.mxu1 %v2043_v39  ;;  %2559 = vmatpush3.msra.mxu0 %v2043_v39 }
 0x7e0   :  { %2556 = vmatmul.mubr.msk.f32.vlgmr.msra.gmra.mrb[12].mxu1 %vm573_vm3, %v2049_v20  ;;  %2561 = vmatmul.mubr.msk.f32.vlgmr.msra.gmra.mrb[14].mxu0 %vm573_vm3, %v2055_v59 }
 0x7e1   :  { %2602 = vmatprep.subr.bf16.mxu1 %v3953_v25  ;;  %2608 = vmatprep.subr.bf16.mxu0 %v3953_v25 }
 0x7e2   :  { %2604 = vmatpush3.bf16.msra.mxu1 %v2603_v46  ;;  %2610 = vmatpush3.bf16.msra.mxu0 %v2609_v11 }
 0x7e3   :  { %2605 = vmatprep.subr.bf16.mxu1 %v3953_v25  ;;  %2611 = vmatprep.subr.bf16.mxu0 %v3953_v25 }
 0x7e4   :  { %2571 = vmatprep.mubr.msk.f32.mxu1 %vm2796_vm2, %v3954_v36  ;;  %2582 = vmatprep.mubr.msk.f32.mxu0 %vm2796_vm2, %v3954_v36 }
 0x7e6   :  { %2607 = vmatpush3.bf16.msra.mxu1 %v2606_v54  ;;  %2613 = vmatpush3.bf16.msra.mxu0 %v2612_v35 }
 0x7e7   :  { %2614 = vmatprep.subr.bf16.mxu1 %v3953_v25 }
 0x8b3   :  { %v2125_v41 = vpop.f32.mrb[12].mxu1  ;;  %v2198_v1 = vpop.f32.mrb[14].mxu0 }
 0x8b4   :  { %v2557_v58 = vpop.f32.mrb[13].mxu1  ;;  %v2562_v38 = vpop.f32.mrb[15].mxu0  ;;  %2572 = vmatmul.mubr.msk.f32.vlgmr.msra.gmra.mrb[14].mxu1 %vm2210_vm10, %v2198_v1  ;;  %2583 = vmatmul.mubr.msk.f32.vlgmr.msra.gmra.mrb[16].mxu0 %vm2210_vm10, %v2125_v41 }
 0x8b5   :  { %2593 = vmatprep.mubr.msk.f32.mxu1 %vm2796_vm2, %v3954_v36  ;;  %2616 = vmatpush3.bf16.msra.mxu1 %v2615_v17  ;;  %v2369_v36 = vld [vmem:[%s3866_s14 + $0x18] sm:$0xff] }
 0x8b6   :  { %2617 = vmatprep.subr.bf16.mxu1 %v3953_v25  ;;  %v2618_v51 = vpack.c.bf16 %v2369_v36, %v2368_v2 }
 0x8b9   :  { %2619 = vmatpush3.bf16.msra.mxu1 %v2618_v51 }
 0x987   :  { %v2280_v0 = vpop.f32.mrb[14].mxu1  ;;  %v2353_v13 = vpop.f32.mrb[16].mxu0 }
 0x988   :  { %v2354_v3 = vadd.f32 %v2353_v13, %v2280_v0  ;;  %v2573_v52 = vpop.f32.mrb[15].mxu1  ;;  %v2584_v14 = vpop.f32.mrb[17].mxu0 }
 0x98a   :  { %v2364_v25 = vadd.f32 %v2488_v49, %v2354_v3 }
 0x98c   :  { %v2365_v47 = vmax.f32 %v2364_v25, 0.0 }
 0x98e   :  { %2594 = vmatmul.mubr.msk.f32.vlgmr.msra.gmra.mrb[16].mxu1 %vm2210_vm10, %v2365_v47 }
 0xa61   :  { %v2446_v45 = vpop.f32.mrb[16].mxu1 }
 0xa62   :  { %v2447_v34 = vadd.f32 %v2489_v24, %v2446_v45  ;;  %v2595_v6 = vpop.f32.mrb[17].mxu1 }
 0xa64   :  { %2451 = vst.msk [vmem:[%s3869_s16] sm:$0xff] %vm2450_vm11, %v2447_v34 }

</bundles_post_ra>
